<compile_context>
chip_gen: v6e
topology: v6e:2x2x1
jax: 0.10.0
libtpu: 0.0.40
codegen_flags: <defaults>
</compile_context>

<pallas_src>
import jax
import jax.numpy as jnp
from jax.experimental import pallas as pl
from jax.experimental.pallas import tpu as pltpu


def _round_up(n, m):
    return ((n + m - 1) // m) * m


def _critic_kernel(xu_ref,
                   w14_ref, b14_ref,
                   w2_ref, b2_ref,
                   w5_ref, b5_ref,
                   w3_ref, w6_ref, b36_ref,
                   q_ref):
    xu = xu_ref[...]                      # (tile_b, IN_PAD) bf16
    h1_pad = w2_ref.shape[0]              # 512

    # Fused layer 1 / layer 4: single (in_pad, 1024) matmul, one relu + cast.
    h = jnp.dot(xu, w14_ref[...], preferred_element_type=jnp.float32) + b14_ref[...]
    h = jnp.maximum(h, 0.0).astype(jnp.bfloat16)
    ha = h[:, :h1_pad]                    # head-1 activations (tile_b, 512)
    hb = h[:, h1_pad:]                    # head-2 activations (tile_b, 512)

    # Layer 2 / layer 5 (different inputs per head -> kept as two matmuls).
    ga = jnp.dot(ha, w2_ref[...], preferred_element_type=jnp.float32) + b2_ref[...]
    ga = jnp.maximum(ga, 0.0).astype(jnp.bfloat16)
    gb = jnp.dot(hb, w5_ref[...], preferred_element_type=jnp.float32) + b5_ref[...]
    gb = jnp.maximum(gb, 0.0).astype(jnp.bfloat16)

    # Layer 3 / layer 6 with packed output: q1 in lane 0, q2 in lane 1.
    q = (jnp.dot(ga, w3_ref[...], preferred_element_type=jnp.float32)
         + jnp.dot(gb, w6_ref[...], preferred_element_type=jnp.float32)
         + b36_ref[...])
    q_ref[...] = q.astype(q_ref.dtype)    # one unmasked 128-lane store


def init_critic_params(key, state_dim, action_dim):
    """PyTorch-default-Linear-like init, pre-padded/packed for the kernel.

    W14: (in_pad, 1024) bf16  = [W1 | W4] side by side (each 512 lanes).
    W2/W5: (512, 384) bf16.  W3/W6: (384, 128) bf16 with data in lane 0 / lane 1.
    Biases f32, padded the same way.
    """
    in_dim = state_dim + action_dim
    in_pad = _round_up(in_dim, 128)
    h1, h1_pad = 400, 512
    h2, h2_pad = 300, 384
    out_pad = 128

    ks = jax.random.split(key, 12)

    def linear(kw, kb, fan_in, fan_out):
        bound = 1.0 / (fan_in ** 0.5)
        w = jax.random.uniform(kw, (fan_in, fan_out), jnp.float32, -bound, bound)
        b = jax.random.uniform(kb, (fan_out,), jnp.float32, -bound, bound)
        return w, b

    w1, b1 = linear(ks[0], ks[1], in_dim, h1)
    w2, b2 = linear(ks[2], ks[3], h1, h2)
    w3, b3 = linear(ks[4], ks[5], h2, 1)
    w4, b4 = linear(ks[6], ks[7], in_dim, h1)
    w5, b5 = linear(ks[8], ks[9], h1, h2)
    w6, b6 = linear(ks[10], ks[11], h2, 1)

    p = {}

    # Fused layer-1/4 weight & bias.
    w14 = jnp.zeros((in_pad, 2 * h1_pad), jnp.float32)
    w14 = w14.at[:in_dim, :h1].set(w1).at[:in_dim, h1_pad:h1_pad + h1].set(w4)
    b14 = jnp.zeros((1, 2 * h1_pad), jnp.float32)
    b14 = b14.at[0, :h1].set(b1).at[0, h1_pad:h1_pad + h1].set(b4)
    p["W14"], p["b14"] = w14.astype(jnp.bfloat16), b14

    def pad_mid(w, b, fi, fo, fi_pad, fo_pad):
        wp = jnp.zeros((fi_pad, fo_pad), jnp.float32).at[:fi, :fo].set(w)
        bp = jnp.zeros((1, fo_pad), jnp.float32).at[0, :fo].set(b)
        return wp.astype(jnp.bfloat16), bp

    p["W2"], p["b2"] = pad_mid(w2, b2, h1, h2, h1_pad, h2_pad)
    p["W5"], p["b5"] = pad_mid(w5, b5, h1, h2, h1_pad, h2_pad)

    # Packed layer-3/6: W3 -> output lane 0, W6 -> output lane 1.
    w3p = jnp.zeros((h2_pad, out_pad), jnp.float32).at[:h2, 0].set(w3[:, 0])
    w6p = jnp.zeros((h2_pad, out_pad), jnp.float32).at[:h2, 1].set(w6[:, 0])
    b36 = jnp.zeros((1, out_pad), jnp.float32).at[0, 0].set(b3[0]).at[0, 1].set(b6[0])
    p["W3"], p["W6"] = w3p.astype(jnp.bfloat16), w6p.astype(jnp.bfloat16)
    p["b36"] = b36
    return p


def critic_forward(x, u, params):
    """x: (B, state_dim) f32, u: (B, action_dim) f32 -> (q1, q2) each (B, 1) f32."""
    B = x.shape[0]
    xu = jnp.concatenate([x, u], axis=1)
    in_dim = xu.shape[1]

    in_pad = params["W14"].shape[0]
    out_pad = params["b36"].shape[1]

    # Batch tiling: large (<=512-row) tiles to amortize per-grid-step overhead,
    # but cap the tile at ceil(batch/2) (rounded to 8) so the grid has >=2 steps
    # whenever possible -> both v7x TensorCores get work via "parallel".
    b_min = _round_up(max(B, 8), 8)
    tile_b = min(512, max(8, _round_up((b_min + 1) // 2, 8)))
    b_pad = _round_up(b_min, tile_b)

    xu_p = jnp.zeros((b_pad, in_pad), jnp.bfloat16)
    xu_p = xu_p.at[:B, :in_dim].set(xu.astype(jnp.bfloat16))

    w_keys = ("W14", "b14", "W2", "b2", "W5", "b5", "W3", "W6", "b36")
    w_args = [params[k] for k in w_keys]

    # Weights/biases: full-array blocks, constant index -> DMA'd once, resident.
    resident = lambda arr: pl.BlockSpec(arr.shape, lambda i: (0, 0))

    q_p = pl.pallas_call(
        _critic_kernel,
        out_shape=jax.ShapeDtypeStruct((b_pad, out_pad), jnp.float32),
        grid=(b_pad // tile_b,),
        in_specs=[pl.BlockSpec((tile_b, in_pad), lambda i: (i, 0))]
                 + [resident(a) for a in w_args],
        out_specs=pl.BlockSpec((tile_b, out_pad), lambda i: (i, 0)),
        compiler_params=pltpu.CompilerParams(
            dimension_semantics=("parallel",)),
    )(xu_p, *w_args)

    # Both Q values come out of one packed slab: lane 0 = q1, lane 1 = q2.
    return q_p[:B, 0:1], q_p[:B, 1:2]


def critic_reference(x, u, params):
    """Pure-JAX reference mirroring the kernel's bf16-MXU / f32-accumulate math.

    Note: bf16 inputs/weights (with f32 accumulation) deviate from a pure-f32
    PyTorch critic by ~1e-3 relative, which is acceptable for TD3.
    """
    B = x.shape[0]
    xu = jnp.concatenate([x, u], axis=1)
    in_dim = xu.shape[1]
    in_pad = params["W14"].shape[0]
    xu_b = (jnp.zeros((B, in_pad), jnp.float32).at[:, :in_dim].set(xu)
            .astype(jnp.bfloat16))

    h1_pad = params["W2"].shape[0]
    h = jnp.dot(xu_b, params["W14"], preferred_element_type=jnp.float32) + params["b14"]
    h = jnp.maximum(h, 0.0).astype(jnp.bfloat16)
    ha, hb = h[:, :h1_pad], h[:, h1_pad:]
    ga = jnp.maximum(
        jnp.dot(ha, params["W2"], preferred_element_type=jnp.float32) + params["b2"],
        0.0).astype(jnp.bfloat16)
    gb = jnp.maximum(
        jnp.dot(hb, params["W5"], preferred_element_type=jnp.float32) + params["b5"],
        0.0).astype(jnp.bfloat16)
    q = (jnp.dot(ga, params["W3"], preferred_element_type=jnp.float32)
         + jnp.dot(gb, params["W6"], preferred_element_type=jnp.float32)
         + params["b36"])
    return q[:, 0:1], q[:, 1:2]


if __name__ == "__main__":
    # AntBulletEnv-v0: state_dim=28, action_dim=8
    state_dim, action_dim = 28, 8
    batch = 2

    key = jax.random.PRNGKey(0)
    k_params, k_x, k_u = jax.random.split(key, 3)
    params = init_critic_params(k_params, state_dim, action_dim)
    x = jax.random.normal(k_x, (batch, state_dim), jnp.float32)
    u = jax.random.normal(k_u, (batch, action_dim), jnp.float32)

    q1, q2 = critic_forward(x, u, params)
    q1 = jax.block_until_ready(q1)
    q2 = jax.block_until_ready(q2)

    r1, r2 = critic_reference(x, u, params)
    assert q1.shape == (batch, 1) and q2.shape == (batch, 1), (q1.shape, q2.shape)
    assert jnp.allclose(q1, r1, atol=1e-3, rtol=1e-3), (q1, r1)
    assert jnp.allclose(q2, r2, atol=1e-3, rtol=1e-3), (q2, r2)

    # Also sanity-check a larger batch (exercises the >=2-step grid path).
    xb = jax.random.normal(k_x, (300, state_dim), jnp.float32)
    ub = jax.random.normal(k_u, (300, action_dim), jnp.float32)
    qb1, qb2 = critic_forward(xb, ub, params)
    qb1 = jax.block_until_ready(qb1)
    rb1, rb2 = critic_reference(xb, ub, params)
    assert qb1.shape == (300, 1) and qb2.shape == (300, 1)
    assert jnp.allclose(qb1, rb1, atol=1e-3, rtol=1e-3)
    assert jnp.allclose(qb2, rb2, atol=1e-3, rtol=1e-3)

    print("KERNEL_OK")
</pallas_src>

<mosaic_0001>
module attributes {stable_mosaic.version = 11 : i64} {
  func.func @_critic_kernel(%arg0: i32, %arg1: memref<8x128xbf16, #tpu.memory_space<vmem>>, %arg2: memref<128x1024xbf16, #tpu.memory_space<vmem>>, %arg3: memref<1x1024xf32, #tpu.memory_space<vmem>>, %arg4: memref<512x384xbf16, #tpu.memory_space<vmem>>, %arg5: memref<1x384xf32, #tpu.memory_space<vmem>>, %arg6: memref<512x384xbf16, #tpu.memory_space<vmem>>, %arg7: memref<1x384xf32, #tpu.memory_space<vmem>>, %arg8: memref<384x128xbf16, #tpu.memory_space<vmem>>, %arg9: memref<384x128xbf16, #tpu.memory_space<vmem>>, %arg10: memref<1x128xf32, #tpu.memory_space<vmem>>, %arg11: memref<8x128xf32, #tpu.memory_space<vmem>>) attributes {dimension_semantics = [#tpu.dimension_semantics<parallel>], iteration_bounds = array<i64: 1>, scalar_prefetch = 0 : i64, scratch_operands = 0 : i64, tpu.core_type = #tpu.core_type<tc>, window_params = [{transform_indices = @transform_0, window_bounds = array<i64: 8, 128>}, {pipeline_mode = #tpu.pipeline_mode<synchronous>, transform_indices = @transform_1, window_bounds = array<i64: 128, 1024>}, {pipeline_mode = #tpu.pipeline_mode<synchronous>, transform_indices = @transform_2, window_bounds = array<i64: 1, 1024>}, {pipeline_mode = #tpu.pipeline_mode<synchronous>, transform_indices = @transform_3, window_bounds = array<i64: 512, 384>}, {pipeline_mode = #tpu.pipeline_mode<synchronous>, transform_indices = @transform_4, window_bounds = array<i64: 1, 384>}, {pipeline_mode = #tpu.pipeline_mode<synchronous>, transform_indices = @transform_5, window_bounds = array<i64: 512, 384>}, {pipeline_mode = #tpu.pipeline_mode<synchronous>, transform_indices = @transform_6, window_bounds = array<i64: 1, 384>}, {pipeline_mode = #tpu.pipeline_mode<synchronous>, transform_indices = @transform_7, window_bounds = array<i64: 384, 128>}, {pipeline_mode = #tpu.pipeline_mode<synchronous>, transform_indices = @transform_8, window_bounds = array<i64: 384, 128>}, {pipeline_mode = #tpu.pipeline_mode<synchronous>, transform_indices = @transform_9, window_bounds = array<i64: 1, 128>}, {transform_indices = @transform_10, window_bounds = array<i64: 8, 128>}]} {
    %c0 = arith.constant 0 : index
    %c0_0 = arith.constant 0 : index
    %0 = vector.load %arg1[%c0, %c0_0] : memref<8x128xbf16, #tpu.memory_space<vmem>>, vector<8x128xbf16>
    %c0_1 = arith.constant 0 : index
    %c0_2 = arith.constant 0 : index
    %1 = vector.load %arg2[%c0_1, %c0_2] : memref<128x1024xbf16, #tpu.memory_space<vmem>>, vector<128x1024xbf16>
    %cst = arith.constant dense<0.000000e+00> : vector<8x1024xf32>
    %2 = tpu.matmul %0, %1, %cst {dimension_numbers = #tpu.dot_dimension_numbers<[1], [0], [0], [1], [0, 0, 1, 1], [], []>} : vector<8x128xbf16>, vector<128x1024xbf16>, vector<8x1024xf32> -> vector<8x1024xf32>
    %c0_3 = arith.constant 0 : index
    %c0_4 = arith.constant 0 : index
    %3 = vector.load %arg3[%c0_3, %c0_4] : memref<1x1024xf32, #tpu.memory_space<vmem>>, vector<1x1024xf32>
    %4 = vector.broadcast %3 : vector<1x1024xf32> to vector<8x1024xf32>
    %5 = arith.addf %2, %4 : vector<8x1024xf32>
    %cst_5 = arith.constant 0.000000e+00 : f32
    %6 = vector.broadcast %cst_5 : f32 to vector<8x1024xf32>
    %7 = arith.maximumf %5, %6 : vector<8x1024xf32>
    %8 = arith.truncf %7 : vector<8x1024xf32> to vector<8x1024xbf16>
    %9 = vector.extract_strided_slice %8 {offsets = [0, 0], sizes = [8, 512], strides = [1, 1]} : vector<8x1024xbf16> to vector<8x512xbf16>
    %10 = vector.extract_strided_slice %8 {offsets = [0, 512], sizes = [8, 512], strides = [1, 1]} : vector<8x1024xbf16> to vector<8x512xbf16>
    %c0_6 = arith.constant 0 : index
    %c0_7 = arith.constant 0 : index
    %11 = vector.load %arg4[%c0_6, %c0_7] : memref<512x384xbf16, #tpu.memory_space<vmem>>, vector<512x384xbf16>
    %cst_8 = arith.constant dense<0.000000e+00> : vector<8x384xf32>
    %12 = tpu.matmul %9, %11, %cst_8 {dimension_numbers = #tpu.dot_dimension_numbers<[1], [0], [0], [1], [0, 0, 1, 1], [], []>} : vector<8x512xbf16>, vector<512x384xbf16>, vector<8x384xf32> -> vector<8x384xf32>
    %c0_9 = arith.constant 0 : index
    %c0_10 = arith.constant 0 : index
    %13 = vector.load %arg5[%c0_9, %c0_10] : memref<1x384xf32, #tpu.memory_space<vmem>>, vector<1x384xf32>
    %14 = vector.broadcast %13 : vector<1x384xf32> to vector<8x384xf32>
    %15 = arith.addf %12, %14 : vector<8x384xf32>
    %cst_11 = arith.constant 0.000000e+00 : f32
    %16 = vector.broadcast %cst_11 : f32 to vector<8x384xf32>
    %17 = arith.maximumf %15, %16 : vector<8x384xf32>
    %18 = arith.truncf %17 : vector<8x384xf32> to vector<8x384xbf16>
    %c0_12 = arith.constant 0 : index
    %c0_13 = arith.constant 0 : index
    %19 = vector.load %arg6[%c0_12, %c0_13] : memref<512x384xbf16, #tpu.memory_space<vmem>>, vector<512x384xbf16>
    %cst_14 = arith.constant dense<0.000000e+00> : vector<8x384xf32>
    %20 = tpu.matmul %10, %19, %cst_14 {dimension_numbers = #tpu.dot_dimension_numbers<[1], [0], [0], [1], [0, 0, 1, 1], [], []>} : vector<8x512xbf16>, vector<512x384xbf16>, vector<8x384xf32> -> vector<8x384xf32>
    %c0_15 = arith.constant 0 : index
    %c0_16 = arith.constant 0 : index
    %21 = vector.load %arg7[%c0_15, %c0_16] : memref<1x384xf32, #tpu.memory_space<vmem>>, vector<1x384xf32>
    %22 = vector.broadcast %21 : vector<1x384xf32> to vector<8x384xf32>
    %23 = arith.addf %20, %22 : vector<8x384xf32>
    %cst_17 = arith.constant 0.000000e+00 : f32
    %24 = vector.broadcast %cst_17 : f32 to vector<8x384xf32>
    %25 = arith.maximumf %23, %24 : vector<8x384xf32>
    %26 = arith.truncf %25 : vector<8x384xf32> to vector<8x384xbf16>
    %c0_18 = arith.constant 0 : index
    %c0_19 = arith.constant 0 : index
    %27 = vector.load %arg8[%c0_18, %c0_19] : memref<384x128xbf16, #tpu.memory_space<vmem>>, vector<384x128xbf16>
    %cst_20 = arith.constant dense<0.000000e+00> : vector<8x128xf32>
    %28 = tpu.matmul %18, %27, %cst_20 {dimension_numbers = #tpu.dot_dimension_numbers<[1], [0], [0], [1], [0, 0, 1, 1], [], []>} : vector<8x384xbf16>, vector<384x128xbf16>, vector<8x128xf32> -> vector<8x128xf32>
    %c0_21 = arith.constant 0 : index
    %c0_22 = arith.constant 0 : index
    %29 = vector.load %arg9[%c0_21, %c0_22] : memref<384x128xbf16, #tpu.memory_space<vmem>>, vector<384x128xbf16>
    %cst_23 = arith.constant dense<0.000000e+00> : vector<8x128xf32>
    %30 = tpu.matmul %26, %29, %cst_23 {dimension_numbers = #tpu.dot_dimension_numbers<[1], [0], [0], [1], [0, 0, 1, 1], [], []>} : vector<8x384xbf16>, vector<384x128xbf16>, vector<8x128xf32> -> vector<8x128xf32>
    %31 = arith.addf %28, %30 : vector<8x128xf32>
    %c0_24 = arith.constant 0 : index
    %c0_25 = arith.constant 0 : index
    %32 = vector.load %arg10[%c0_24, %c0_25] : memref<1x128xf32, #tpu.memory_space<vmem>>, vector<1x128xf32>
    %33 = vector.broadcast %32 : vector<1x128xf32> to vector<8x128xf32>
    %34 = arith.addf %31, %33 : vector<8x128xf32>
    %c0_26 = arith.constant 0 : index
    %c0_27 = arith.constant 0 : index
    %35 = vector.load %arg11[%c0_26, %c0_27] : memref<8x128xf32, #tpu.memory_space<vmem>>, vector<8x128xf32>
    tpu.vector_store %arg11[%c0_26, %c0_27], %34 {strides = array<i32>} : memref<8x128xf32, #tpu.memory_space<vmem>>, vector<8x128xf32>,
    return
  }
  func.func @transform_0(%arg0: i32) -> (i32, i32) {
    %c0_i32 = arith.constant 0 : i32
    %c0_i32_0 = arith.constant 0 : i32
    return %arg0, %c0_i32 : i32, i32
  }
  func.func @transform_1(%arg0: i32) -> (i32, i32) {
    %c0_i32 = arith.constant 0 : i32
    %c0_i32_0 = arith.constant 0 : i32
    %c0_i32_1 = arith.constant 0 : i32
    return %c0_i32, %c0_i32_0 : i32, i32
  }
  func.func @transform_2(%arg0: i32) -> (i32, i32) {
    %c0_i32 = arith.constant 0 : i32
    %c0_i32_0 = arith.constant 0 : i32
    %c0_i32_1 = arith.constant 0 : i32
    return %c0_i32, %c0_i32_0 : i32, i32
  }
  func.func @transform_3(%arg0: i32) -> (i32, i32) {
    %c0_i32 = arith.constant 0 : i32
    %c0_i32_0 = arith.constant 0 : i32
    %c0_i32_1 = arith.constant 0 : i32
    return %c0_i32, %c0_i32_0 : i32, i32
  }
  func.func @transform_4(%arg0: i32) -> (i32, i32) {
    %c0_i32 = arith.constant 0 : i32
    %c0_i32_0 = arith.constant 0 : i32
    %c0_i32_1 = arith.constant 0 : i32
    return %c0_i32, %c0_i32_0 : i32, i32
  }
  func.func @transform_5(%arg0: i32) -> (i32, i32) {
    %c0_i32 = arith.constant 0 : i32
    %c0_i32_0 = arith.constant 0 : i32
    %c0_i32_1 = arith.constant 0 : i32
    return %c0_i32, %c0_i32_0 : i32, i32
  }
  func.func @transform_6(%arg0: i32) -> (i32, i32) {
    %c0_i32 = arith.constant 0 : i32
    %c0_i32_0 = arith.constant 0 : i32
    %c0_i32_1 = arith.constant 0 : i32
    return %c0_i32, %c0_i32_0 : i32, i32
  }
  func.func @transform_7(%arg0: i32) -> (i32, i32) {
    %c0_i32 = arith.constant 0 : i32
    %c0_i32_0 = arith.constant 0 : i32
    %c0_i32_1 = arith.constant 0 : i32
    return %c0_i32, %c0_i32_0 : i32, i32
  }
  func.func @transform_8(%arg0: i32) -> (i32, i32) {
    %c0_i32 = arith.constant 0 : i32
    %c0_i32_0 = arith.constant 0 : i32
    %c0_i32_1 = arith.constant 0 : i32
    return %c0_i32, %c0_i32_0 : i32, i32
  }
  func.func @transform_9(%arg0: i32) -> (i32, i32) {
    %c0_i32 = arith.constant 0 : i32
    %c0_i32_0 = arith.constant 0 : i32
    %c0_i32_1 = arith.constant 0 : i32
    return %c0_i32, %c0_i32_0 : i32, i32
  }
  func.func @transform_10(%arg0: i32) -> (i32, i32) {
    %c0_i32 = arith.constant 0 : i32
    %c0_i32_0 = arith.constant 0 : i32
    return %arg0, %c0_i32 : i32, i32
  }
}

</mosaic_0001>

<bundles_post_ra>
// kernel: tpu_custom_call.1
= control target key start
LH: loop header
LB: loop body
LE: loop exit
PB: predicated region body
PF: predicated region fallthrough
CT: control target
= control target key end

     0   :  { %15 = vsyncpa [#allocation3], 0  ;;  %s4160_s0 = inlined_call_operand.hbm [shape: bf16[8,128], index: 0, kind: input, shape index: {}]   ;;  %s4161_s1 = inlined_call_operand.hbm [shape: bf16[128,1024], index: 1, kind: input, shape index: {}]   ;;  %s4162_s2 = inlined_call_operand.hbm [shape: f32[1,1024], index: 2, kind: input, shape index: {}]   ;;  %s4163_s3 = inlined_call_operand.hbm [shape: bf16[512,384], index: 3, kind: input, shape index: {}]   ;;  %s4164_s4 = inlined_call_operand.vmem [shape: f32[1,384], index: 4, kind: input, shape index: {}]   ;;  %s4165_s5 = inlined_call_operand.hbm [shape: bf16[512,384], index: 5, kind: input, shape index: {}]   ;;  %s4166_s6 = inlined_call_operand.vmem [shape: f32[1,384], index: 6, kind: input, shape index: {}]   ;;  %s4167_s7 = inlined_call_operand.hbm [shape: bf16[384,128], index: 7, kind: input, shape index: {}]   ;;  %s4168_s8 = inlined_call_operand.hbm [shape: bf16[384,128], index: 8, kind: input, shape index: {}]   ;;  %s4169_s9 = inlined_call_operand.vmem [shape: f32[1,128], index: 9, kind: input, shape index: {}]   ;;  %s4170_s10 = inlined_call_operand.hbm [shape: f32[8,128], index: 10, kind: output, shape index: {}]  }
   0x1   :  { %16 = vsyncpa [#allocation6], 0 }
   0x2   :  { %17 = vsyncpa [#allocation9], 0 }
   0x3   :  { %18 = vsyncpa [#allocation12], 0 }
   0x4   :  { %19 = vsyncpa [#allocation4], 0  ;;  %s3942_s13 = smov [#allocation5]  }
   0x5   :  { %s35_s14 = sshll.u32 %s3942_s13, 4  ;;  %s36_s14 = int_to_ptr.vmem [resolvable:$true] %s35_s14 }
   0x6   :  { %s3780_s15 = scalar_lea.vmem %s36_s14, 8192  ;;  %p3785_p1 = scmp.lt.s32.totalorder %s36_s14, %s36_s14 }
   0x7   :  { %p3781_p0 = scmp.ne.s32.totalorder %s36_s14, %s3780_s15  ;;  %p3786_p2 = scmp.lt.s32.totalorder %s3780_s15, %s3780_s15 }
   0x9   :  { %p3787_p3 = por %p3786_p2, %p3785_p1 }
   0xb   :  { %p3788_p4 = pnand %p3787_p3, %p3781_p0 }
   0xd   :  { %3791 = shalt.err (!%p3788_p4)
}
   0xe   :  { %s3943_s16 = smov 512   ;;  %s3944_s17 = smov 32  }
   0xf   :  { %41 = dma.hbm_to_vmem [thread:$0]  %s4161_s1, 8192, %s36_s14, [#allocation6], %s3943_s16, %s3943_s16, %s3944_s17  }
  0x10   :  { %s3945_s20 = smov [#allocation8]  }
  0x11   :  { %s57_s21 = sshll.u32 %s3945_s20, 4  ;;  %s58_s21 = int_to_ptr.vmem [resolvable:$true] %s57_s21 }
  0x12   :  { %s3800_s22 = scalar_lea.vmem %s58_s21, 12288  ;;  %p3805_p6 = scmp.lt.s32.totalorder %s58_s21, %s58_s21 }
  0x13   :  { %p3801_p5 = scmp.ne.s32.totalorder %s58_s21, %s3800_s22  ;;  %p3806_p7 = scmp.lt.s32.totalorder %s3800_s22, %s3800_s22 }
  0x15   :  { %p3807_p8 = por %p3806_p7, %p3805_p6 }
  0x17   :  { %p3808_p9 = pnand %p3807_p8, %p3801_p5 }
  0x19   :  { %3811 = shalt.err (!%p3808_p9)
}
  0x1a   :  { %s3946_s23 = smov 192   ;;  %s3947_s24 = smov 12  }
  0x1b   :  { %63 = dma.hbm_to_vmem [thread:$0]  %s4163_s3, 12288, %s58_s21, [#allocation9], %s3946_s23, %s3946_s23, %s3947_s24  }
  0x1c   :  { %s3948_s1 = smov [#allocation11]  }
  0x1d   :  { %s85_s27 = sshll.u32 %s3948_s1, 4  ;;  %s86_s27 = int_to_ptr.vmem [resolvable:$true] %s85_s27 }
  0x1e   :  { %s3820_s28 = scalar_lea.vmem %s86_s27, 3072  ;;  %p3825_p11 = scmp.lt.s32.totalorder %s86_s27, %s86_s27 }
  0x1f   :  { %p3821_p10 = scmp.ne.s32.totalorder %s86_s27, %s3820_s28  ;;  %p3826_p12 = scmp.lt.s32.totalorder %s3820_s28, %s3820_s28 }
  0x21   :  { %p3827_p13 = por %p3826_p12, %p3825_p11 }
  0x23   :  { %p3828_p0 = pnand %p3827_p13, %p3821_p10 }
  0x25   :  { %3831 = shalt.err (!%p3828_p0)
}
  0x26   :  { %s3949_s29 = smov 64   ;;  %s3950_s30 = smov 4  }
  0x27   :  { %91 = dma.hbm_to_vmem [thread:$0]  %s4167_s7, 3072, %s86_s27, [#allocation12], %s3949_s29, %s3949_s29, %s3950_s30  }
  0x28   :  { %s3951_s3 = smov [#allocation2]   ;;  %s3952_s14 = smov [#allocation7]  }
  0x29   :  { %s26_s13 = sshll.u32 %s3951_s3, 4  ;;  %s48_s15 = sshll.u32 %s3952_s14, 4  ;;  %s27_s13 = int_to_ptr.vmem [resolvable:$true] %s26_s13  ;;  %s49_s15 = int_to_ptr.vmem [resolvable:$true] %s48_s15 }
  0x2a   :  { %s3840_s16 = scalar_lea.vmem %s27_s13, 64  ;;  %p3845_p2 = scmp.lt.s32.totalorder %s27_s13, %s27_s13 }
  0x2b   :  { %p3841_p1 = scmp.ne.s32.totalorder %s27_s13, %s3840_s16  ;;  %p3846_p3 = scmp.lt.s32.totalorder %s3840_s16, %s3840_s16 }
  0x2d   :  { %p3847_p4 = por %p3846_p3, %p3845_p2 }
  0x2f   :  { %p3848_p5 = pnand %p3847_p4, %p3841_p1 }
  0x31   :  { %3851 = shalt.err (!%p3848_p5)
}
  0x32   :  { %29 = dma.hbm_to_vmem [thread:$0]  %s4160_s0, 64, %s27_s13, [#allocation3]  }
  0x33   :  { %s3860_s19 = scalar_lea.vmem %s49_s15, 128  ;;  %p3865_p7 = scmp.lt.s32.totalorder %s49_s15, %s49_s15 }
  0x34   :  { %p3861_p6 = scmp.ne.s32.totalorder %s49_s15, %s3860_s19  ;;  %p3866_p8 = scmp.lt.s32.totalorder %s3860_s19, %s3860_s19 }
  0x36   :  { %p3867_p9 = por %p3866_p8, %p3865_p7 }
  0x38   :  { %p3868_p10 = pnand %p3867_p9, %p3861_p6 }
  0x3a   :  { %3871 = shalt.err (!%p3868_p10)
}
  0x3b   :  { %51 = dma.hbm_to_vmem [thread:$0]  %s4162_s2, 128, %s49_s15, [#allocation6]  }
  0x3c   :  { %s3953_s21 = smov [#allocation10]   ;;  %s3954_s25 = smov [#allocation13]  }
  0x3d   :  { %s71_s22 = sshll.u32 %s3953_s21, 4  ;;  %s97_s26 = sshll.u32 %s3954_s25, 4  ;;  %s72_s22 = int_to_ptr.vmem [resolvable:$true] %s71_s22  ;;  %s98_s26 = int_to_ptr.vmem [resolvable:$true] %s97_s26 }
  0x3e   :  { %s3880_s1 = scalar_lea.vmem %s72_s22, 12288  ;;  %p3885_p12 = scmp.lt.s32.totalorder %s72_s22, %s72_s22 }
  0x3f   :  { %p3881_p11 = scmp.ne.s32.totalorder %s72_s22, %s3880_s1  ;;  %p3886_p13 = scmp.lt.s32.totalorder %s3880_s1, %s3880_s1 }
  0x41   :  { %p3887_p0 = por %p3886_p13, %p3885_p12 }
  0x43   :  { %p3888_p1 = pnand %p3887_p0, %p3881_p11 }
  0x45   :  { %3891 = shalt.err (!%p3888_p1)
}
  0x46   :  { %77 = dma.hbm_to_vmem [thread:$0]  %s4165_s5, 12288, %s72_s22, [#allocation9], %s3946_s23, %s3946_s23, %s3947_s24  }
  0x47   :  { %s3900_s2 = scalar_lea.vmem %s98_s26, 3072  ;;  %p3905_p3 = scmp.lt.s32.totalorder %s98_s26, %s98_s26 }
  0x48   :  { %p3901_p2 = scmp.ne.s32.totalorder %s98_s26, %s3900_s2  ;;  %p3906_p4 = scmp.lt.s32.totalorder %s3900_s2, %s3900_s2 }
  0x4a   :  { %p3907_p5 = por %p3906_p4, %p3905_p3 }
  0x4c   :  { %p3908_p6 = pnand %p3907_p5, %p3901_p2 }
  0x4e   :  { %3911 = shalt.err (!%p3908_p6)
}
  0x4f   :  { %103 = dma.hbm_to_vmem [thread:$0]  %s4168_s8, 3072, %s98_s26, [#allocation12], %s3949_s29, %s3949_s29, %s3950_s30  }
  0x50   :  { %3932 = dma.done.wait [#allocation3], 64  }
  0x51   :  { %3933 = vsyncadd [#allocation3], 4294967232 }
  0x52   :  { %3934 = dma.done.wait [#allocation6], 8320  }
  0x53   :  { %3935 = vsyncadd [#allocation6], 4294958976 }
  0x54   :  { %3936 = dma.done.wait [#allocation9], 24576  }
  0x55   :  { %3937 = vsyncadd [#allocation9], 4294942720 }
  0x56   :  { %3938 = dma.done.wait [#allocation12], 6144  }
  0x57   :  { %3939 = vsyncadd [#allocation12], 4294961152  ;;  %v3955_v0 = vmov 0   ;;  %v185_v1 = vld [vmem:[#allocation5 + $0x1c0] sm:$0xff]  ;;  %v186_v3 = vld [vmem:[#allocation5 + $0x1c8] sm:$0xff]  ;;  %vm3957_vm0 = vmmov 0  }
  0x58   :  { %587 = vmatprep.mubr.bf16.mxu0 %v3955_v0  ;;  %628 = vmatprep.mubr.bf16.mxu1 %v3955_v0  ;;  %v189_v2 = vld [vmem:[#allocation5 + $0x1e0] sm:$0xff]  ;;  %v190_v5 = vld [vmem:[#allocation5 + $0x1e8] sm:$0xff]  ;;  %v187_v62 = vld [vmem:[#allocation5 + $0x1d0] sm:$0xff]  ;;  %s3958_s29 = smov [#allocation14]  }
  0x59   :  { %v3013_v4 = vcombine.high %v185_v1, %v189_v2  ;;  %v3012_v6 = vcombine.low %v185_v1, %v189_v2  ;;  %v177_v7 = vld [vmem:[#allocation5 + $0x180] sm:$0xff]  ;;  %v3015_v9 = vcombine.high %v186_v3, %v190_v5  ;;  %v3014_v10 = vcombine.low %v186_v3, %v190_v5  ;;  %v178_v12 = vld [vmem:[#allocation5 + $0x188] sm:$0xff]  ;;  %v191_v1 = vld [vmem:[#allocation5 + $0x1f0] sm:$0xff]  ;;  %s2944_s30 = sshll.u32 %s3958_s29, 4  ;;  %s2945_s30 = int_to_ptr.vmem [resolvable:$true] %s2944_s30 }
  0x5a   :  { %v181_v8 = vld [vmem:[#allocation5 + $0x1a0] sm:$0xff]  ;;  %v182_v13 = vld [vmem:[#allocation5 + $0x1a8] sm:$0xff]  ;;  %v188_v2 = vld [vmem:[#allocation5 + $0x1d8] sm:$0xff]  ;;  %s3912_s12 = scalar_lea.vmem %s2945_s30, 128  ;;  %p3917_p8 = scmp.lt.s32.totalorder %s2945_s30, %s2945_s30 }
  0x5b   :  { %v3005_v11 = vcombine.high %v177_v7, %v181_v8  ;;  %v169_v14 = vld [vmem:[#allocation5 + $0x140] sm:$0xff]  ;;  %555 = vmatprep.subr.bf16.mxu0 %v3013_v4  ;;  %v3007_v15 = vcombine.high %v178_v12, %v182_v13  ;;  %v170_v17 = vld [vmem:[#allocation5 + $0x148] sm:$0xff]  ;;  %596 = vmatprep.subr.bf16.mxu1 %v3015_v9  ;;  %v3004_v19 = vcombine.low %v177_v7, %v181_v8  ;;  %v192_v3 = vld [vmem:[#allocation5 + $0x1f8] sm:$0xff]  ;;  %p3913_p7 = scmp.ne.s32.totalorder %s2945_s30, %s3912_s12  ;;  %p3918_p9 = scmp.lt.s32.totalorder %s3912_s12, %s3912_s12 }
  0x5c   :  { %v173_v16 = vld [vmem:[#allocation5 + $0x160] sm:$0xff]  ;;  %v174_v18 = vld [vmem:[#allocation5 + $0x168] sm:$0xff]  ;;  %556 = vmatpush1.bf16.msra.mxu0 %v3012_v6  ;;  %597 = vmatpush1.bf16.msra.mxu1 %v3014_v10  ;;  %v3006_v20 = vcombine.low %v178_v12, %v182_v13  ;;  %v3017_v6 = vcombine.high %v187_v62, %v191_v1  ;;  %v179_v7 = vld [vmem:[#allocation5 + $0x190] sm:$0xff]  ;;  %v3019_v8 = vcombine.high %v188_v2, %v192_v3 }
  0x5d   :  { %557 = vmatprep.subr.bf16.mxu0 %v3005_v11  ;;  %v2997_v21 = vcombine.high %v169_v14, %v173_v16  ;;  %598 = vmatprep.subr.bf16.mxu1 %v3007_v15  ;;  %v2999_v22 = vcombine.high %v170_v17, %v174_v18  ;;  %v161_v23 = vld [vmem:[#allocation5 + $0x100] sm:$0xff]  ;;  %v162_v25 = vld [vmem:[#allocation5 + $0x108] sm:$0xff]  ;;  %v2996_v27 = vcombine.low %v169_v14, %v173_v16  ;;  %v183_v9 = vld [vmem:[#allocation5 + $0x1b0] sm:$0xff]  ;;  %p3919_p10 = por %p3918_p9, %p3917_p8 }
  0x5e   :  { %v165_v24 = vld [vmem:[#allocation5 + $0x120] sm:$0xff]  ;;  %v166_v26 = vld [vmem:[#allocation5 + $0x128] sm:$0xff]  ;;  %v2998_v28 = vcombine.low %v170_v17, %v174_v18  ;;  %v180_v10 = vld [vmem:[#allocation5 + $0x198] sm:$0xff]  ;;  %v3016_v13 = vcombine.low %v187_v62, %v191_v1  ;;  %v3018_v14 = vcombine.low %v188_v2, %v192_v3  ;;  %v3009_v15 = vcombine.high %v179_v7, %v183_v9 }
  0x5f   :  { %v2989_v29 = vcombine.high %v161_v23, %v165_v24  ;;  %v2991_v30 = vcombine.high %v162_v25, %v166_v26  ;;  %v153_v31 = vld [vmem:[#allocation5 + $0xc0] sm:$0xff]  ;;  %v154_v33 = vld [vmem:[#allocation5 + $0xc8] sm:$0xff]  ;;  %v2988_v35 = vcombine.low %v161_v23, %v165_v24  ;;  %v2990_v36 = vcombine.low %v162_v25, %v166_v26  ;;  %v184_v11 = vld [vmem:[#allocation5 + $0x1b8] sm:$0xff]  ;;  %p3920_p11 = pnand %p3919_p10, %p3913_p7 }
  0x60   :  { %558 = vmatpush1.bf16.msra.mxu0 %v3004_v19  ;;  %599 = vmatpush1.bf16.msra.mxu1 %v3006_v20  ;;  %v157_v32 = vld [vmem:[#allocation5 + $0xe0] sm:$0xff]  ;;  %v158_v34 = vld [vmem:[#allocation5 + $0xe8] sm:$0xff]  ;;  %v4049_v12 = vld [vmem:[#allocation2] sm:$0xf]  ;;  %v3011_v17 = vcombine.high %v180_v10, %v184_v11 }
  0x61   :  { %559 = vmatprep.subr.bf16.mxu0 %v2997_v21  ;;  %600 = vmatprep.subr.bf16.mxu1 %v2999_v22  ;;  %v2981_v37 = vcombine.high %v153_v31, %v157_v32  ;;  %v2983_v38 = vcombine.high %v154_v33, %v158_v34  ;;  %v145_v39 = vld [vmem:[#allocation5 + $0x80] sm:$0xff]  ;;  %v146_v41 = vld [vmem:[#allocation5 + $0x88] sm:$0xff]  ;;  %v2980_v43 = vcombine.low %v153_v31, %v157_v32  ;;  %v171_v16 = vld [vmem:[#allocation5 + $0x150] sm:$0xff] }
  0x62   :  { %v149_v40 = vld [vmem:[#allocation5 + $0xa0] sm:$0xff]  ;;  %v150_v42 = vld [vmem:[#allocation5 + $0xa8] sm:$0xff]  ;;  %v2982_v44 = vcombine.low %v154_v33, %v158_v34  ;;  %v175_v18 = vld [vmem:[#allocation5 + $0x170] sm:$0xff]  ;;  %v3008_v21 = vcombine.low %v179_v7, %v183_v9  ;;  %v3010_v22 = vcombine.low %v180_v10, %v184_v11 }
  0x63   :  { %v2973_v45 = vcombine.high %v145_v39, %v149_v40  ;;  %v2975_v46 = vcombine.high %v146_v41, %v150_v42  ;;  %v137_v47 = vld [vmem:[#allocation5 + $0x40] sm:$0xff]  ;;  %v138_v49 = vld [vmem:[#allocation5 + $0x48] sm:$0xff]  ;;  %v2972_v51 = vcombine.low %v145_v39, %v149_v40  ;;  %v2974_v52 = vcombine.low %v146_v41, %v150_v42  ;;  %v172_v19 = vld [vmem:[#allocation5 + $0x158] sm:$0xff] }
  0x64   :  { %560 = vmatpush1.bf16.msra.mxu0 %v2996_v27  ;;  %601 = vmatpush1.bf16.msra.mxu1 %v2998_v28  ;;  %v141_v48 = vld [vmem:[#allocation5 + $0x60] sm:$0xff]  ;;  %v142_v50 = vld [vmem:[#allocation5 + $0x68] sm:$0xff]  ;;  %v176_v20 = vld [vmem:[#allocation5 + $0x178] sm:$0xff]  ;;  %v3001_v23 = vcombine.high %v171_v16, %v175_v18 }
  0x65   :  { %561 = vmatprep.subr.bf16.mxu0 %v2989_v29  ;;  %602 = vmatprep.subr.bf16.mxu1 %v2991_v30  ;;  %v2965_v53 = vcombine.high %v137_v47, %v141_v48  ;;  %v129_v54 = vld [vmem:[#allocation5] sm:$0xff]  ;;  %v2967_v55 = vcombine.high %v138_v49, %v142_v50  ;;  %v130_v57 = vld [vmem:[#allocation5 + $0x8] sm:$0xff]  ;;  %v2964_v59 = vcombine.low %v137_v47, %v141_v48  ;;  %v163_v24 = vld [vmem:[#allocation5 + $0x110] sm:$0xff] }
  0x66   :  { %v133_v56 = vld [vmem:[#allocation5 + $0x20] sm:$0xff]  ;;  %v134_v58 = vld [vmem:[#allocation5 + $0x28] sm:$0xff]  ;;  %v2966_v60 = vcombine.low %v138_v49, %v142_v50  ;;  %v3003_v25 = vcombine.high %v172_v19, %v176_v20  ;;  %v167_v26 = vld [vmem:[#allocation5 + $0x130] sm:$0xff]  ;;  %v3000_v29 = vcombine.low %v171_v16, %v175_v18  ;;  %v3002_v30 = vcombine.low %v172_v19, %v176_v20 }
  0x67   :  { %v2957_v61 = vcombine.high %v129_v54, %v133_v56  ;;  %v2959_v63 = vcombine.high %v130_v57, %v134_v58  ;;  %v2956_v4 = vcombine.low %v129_v54, %v133_v56  ;;  %v2958_v5 = vcombine.low %v130_v57, %v134_v58  ;;  %v164_v27 = vld [vmem:[#allocation5 + $0x118] sm:$0xff]  ;;  %v155_v32 = vld [vmem:[#allocation5 + $0xd0] sm:$0xff] }
  0x68   :  { %562 = vmatpush1.bf16.msra.mxu0 %v2988_v35  ;;  %603 = vmatpush1.bf16.msra.mxu1 %v2990_v36  ;;  %v168_v28 = vld [vmem:[#allocation5 + $0x138] sm:$0xff]  ;;  %v2993_v31 = vcombine.high %v163_v24, %v167_v26  ;;  %v159_v34 = vld [vmem:[#allocation5 + $0xf0] sm:$0xff] }
  0x69   :  { %563 = vmatprep.subr.bf16.mxu0 %v2981_v37  ;;  %604 = vmatprep.subr.bf16.mxu1 %v2983_v38  ;;  %v2995_v33 = vcombine.high %v164_v27, %v168_v28  ;;  %v156_v35 = vld [vmem:[#allocation5 + $0xd8] sm:$0xff]  ;;  %v2992_v37 = vcombine.low %v163_v24, %v167_v26  ;;  %v2994_v38 = vcombine.low %v164_v27, %v168_v28  ;;  %v147_v40 = vld [vmem:[#allocation5 + $0x90] sm:$0xff] }
  0x6a   :  { %v160_v36 = vld [vmem:[#allocation5 + $0xf8] sm:$0xff]  ;;  %v2985_v39 = vcombine.high %v155_v32, %v159_v34  ;;  %v151_v41 = vld [vmem:[#allocation5 + $0xb0] sm:$0xff] }
  0x6b   :  { %v148_v42 = vld [vmem:[#allocation5 + $0x98] sm:$0xff]  ;;  %v139_v47 = vld [vmem:[#allocation5 + $0x50] sm:$0xff] }
  0x6c   :  { %564 = vmatpush1.bf16.msra.mxu0 %v2980_v43  ;;  %605 = vmatpush1.bf16.msra.mxu1 %v2982_v44  ;;  %v152_v43 = vld [vmem:[#allocation5 + $0xb8] sm:$0xff]  ;;  %v2984_v44 = vcombine.low %v155_v32, %v159_v34  ;;  %v143_v49 = vld [vmem:[#allocation5 + $0x70] sm:$0xff] }
  0x6d   :  { %565 = vmatprep.subr.bf16.mxu0 %v2973_v45  ;;  %606 = vmatprep.subr.bf16.mxu1 %v2975_v46  ;;  %v2986_v45 = vcombine.low %v156_v35, %v160_v36  ;;  %v2977_v46 = vcombine.high %v147_v40, %v151_v41  ;;  %v2979_v48 = vcombine.high %v148_v42, %v152_v43  ;;  %v140_v50 = vld [vmem:[#allocation5 + $0x58] sm:$0xff]  ;;  %v135_v57 = vld [vmem:[#allocation5 + $0x30] sm:$0xff] }
  0x6e   :  { %v2969_v54 = vcombine.high %v139_v47, %v143_v49  ;;  %v132_v58 = vld [vmem:[#allocation5 + $0x18] sm:$0xff]  ;;  %v3470_v1 = vld [vmem:[#allocation8 + $0xac] ss:$12 sps:$4 sm:$0xff]   ;;  %v3482_v11 = vld [vmem:[#allocation8 + $0x7c] ss:$12 sps:$4 sm:$0xff]  }
  0x6f   :  { %v3473_v3 = vld [vmem:[#allocation8 + $0x22c] ss:$12 sps:$4 sm:$0xff]   ;;  %v3476_v7 = vld [vmem:[#allocation8 + $0x94] ss:$12 sps:$4 sm:$0xff]   ;;  %v3474_v9 = vld [vmem:[#allocation8 + $0x90] ss:$12 sps:$4 sm:$0xff]  }
  0x70   :  { %566 = vmatpush1.bf16.msra.mxu0 %v2972_v51  ;;  %607 = vmatpush1.bf16.msra.mxu1 %v2974_v52  ;;  %v144_v51 = vld [vmem:[#allocation5 + $0x78] sm:$0xff]  ;;  %v2976_v52 = vcombine.low %v147_v40, %v151_v41  ;;  %v3486_v18 = vld [vmem:[#allocation8 + $0x60] ss:$12 sps:$4 sm:$0xff]   ;;  %v3506_v27 = vld [vmem:[#allocation8 + $0x1c] ss:$12 sps:$4 sm:$0xff]  }
  0x71   :  { %567 = vmatprep.subr.bf16.mxu0 %v2965_v53  ;;  %608 = vmatprep.subr.bf16.mxu1 %v2967_v55  ;;  %v2978_v53 = vcombine.low %v148_v42, %v152_v43  ;;  %v131_v55 = vld [vmem:[#allocation5 + $0x10] sm:$0xff]  ;;  %v2971_v56 = vcombine.high %v140_v50, %v144_v51  ;;  %v3477_v10 = vld [vmem:[#allocation8 + $0x210] ss:$12 sps:$4 sm:$0xff]   ;;  %v3503_v24 = vld [vmem:[#allocation8 + $0x1b4] ss:$12 sps:$4 sm:$0xff]  }
  0x72   :  { %v2961_v62 = vcombine.high %v131_v55, %v135_v57  ;;  %v2960_v2 = vcombine.low %v131_v55, %v135_v57  ;;  %v3488_v16 = vld [vmem:[#allocation8 + $0x64] ss:$12 sps:$4 sm:$0xff]   ;;  %v3489_v19 = vld [vmem:[#allocation8 + $0x1e0] ss:$12 sps:$4 sm:$0xff]   ;;  %v3509_v28 = vld [vmem:[#allocation8 + $0x19c] ss:$12 sps:$4 sm:$0xff]  }
  0x73   :  { %v3494_v20 = vld [vmem:[#allocation8 + $0x4c] ss:$12 sps:$4 sm:$0xff]   ;;  %v3501_v26 = vld [vmem:[#allocation8 + $0x1b0] ss:$12 sps:$4 sm:$0xff]   ;;  %v3527_v40 = vld [vmem:[#allocation8 + $0x2d4] ss:$12 sps:$4 sm:$0xff]  }
  0x74   :  { %568 = vmatpush1.bf16.msra.mxu0 %v2964_v59  ;;  %609 = vmatpush1.bf16.msra.mxu1 %v2966_v60  ;;  %v136_v59 = vld [vmem:[#allocation5 + $0x38] sm:$0xff]  ;;  %v2968_v60 = vcombine.low %v139_v47, %v143_v49  ;;  %v3513_v34 = vld [vmem:[#allocation8 + $0x180] ss:$12 sps:$4 sm:$0xff]   ;;  %v3530_v42 = vld [vmem:[#allocation8 + $0x13c] ss:$12 sps:$4 sm:$0xff]  }
  0x75   :  { %569 = vmatprep.subr.bf16.mxu0 %v2957_v61  ;;  %610 = vmatprep.subr.bf16.mxu1 %v2959_v63  ;;  %v2970_v61 = vcombine.low %v140_v50, %v144_v51  ;;  %v2963_v63 = vcombine.high %v132_v58, %v136_v59  ;;  %v3515_v32 = vld [vmem:[#allocation8 + $0x184] ss:$12 sps:$4 sm:$0xff]   ;;  %v3533_v43 = vld [vmem:[#allocation8 + $0x2bc] ss:$12 sps:$4 sm:$0xff]   ;;  %v3537_v49 = vld [vmem:[#allocation8 + $0x2a0] ss:$12 sps:$4 sm:$0xff]  }
  0x76   :  { %v3525_v41 = vld [vmem:[#allocation8 + $0x2d0] ss:$12 sps:$4 sm:$0xff]   ;;  %v3542_v50 = vld [vmem:[#allocation8 + $0x10c] ss:$12 sps:$4 sm:$0xff]   ;;  %v3551_v55 = vld [vmem:[#allocation8 + $0x274] ss:$12 sps:$4 sm:$0xff]  }
  0x77   :  { %v3539_v47 = vld [vmem:[#allocation8 + $0x2a4] ss:$12 sps:$4 sm:$0xff]   ;;  %v3545_v51 = vld [vmem:[#allocation8 + $0x28c] ss:$12 sps:$4 sm:$0xff]  }
  0x78   :  { %570 = vmatpush1.bf16.msra.mxu0 %v2956_v4  ;;  %611 = vmatpush1.bf16.msra.mxu1 %v2958_v5  ;;  %v2962_v4 = vcombine.low %v132_v58, %v136_v59  ;;  %v3468_v5 = vld [vmem:[#allocation8 + $0xa8] ss:$12 sps:$4 sm:$0xff]   ;;  %v3549_v57 = vld [vmem:[#allocation8 + $0x270] ss:$12 sps:$4 sm:$0xff]  }
  0x79   :  { %637 = vmatprep.subr.bf16.mxu0 %v3017_v6  ;;  %678 = vmatprep.subr.bf16.mxu1 %v3019_v8  ;;  %v3471_v6 = vld [vmem:[#allocation8 + $0x228] ss:$12 sps:$4 sm:$0xff]  }
  0x7a   :  { %v3479_v8 = vld [vmem:[#allocation8 + $0x214] ss:$12 sps:$4 sm:$0xff]   ;;  %v3554_v58 = vld [vmem:[#allocation8 + $0xdc] ss:$12 sps:$4 sm:$0xff]  }
  0x7b   :  { %588 = vmatmul.mubr.bf16.vlgmr.msra.gmra.mxu0 %v4049_v12  ;;  %629 = vmatmul.mubr.bf16.vlgmr.msra.gmra.mxu1 %v4049_v12  ;;  %v3557_v59 = vld [vmem:[#allocation8 + $0x25c] ss:$12 sps:$4 sm:$0xff]  }
  0x7c   :  { %638 = vmatpush1.bf16.msra.mxu0 %v3016_v13  ;;  %679 = vmatpush1.bf16.msra.mxu1 %v3018_v14  ;;  %v3485_v13 = vld [vmem:[#allocation8 + $0x1fc] ss:$12 sps:$4 sm:$0xff]   ;;  %v3480_v14 = vld [vmem:[#allocation8 + $0x78] ss:$12 sps:$4 sm:$0xff]  }
  0x7d   :  { %639 = vmatprep.subr.bf16.mxu0 %v3009_v15  ;;  %680 = vmatprep.subr.bf16.mxu1 %v3011_v17  ;;  %v3483_v15 = vld [vmem:[#allocation8 + $0x1f8] ss:$12 sps:$4 sm:$0xff]  }
  0x7e   :  { %669 = vmatprep.mubr.bf16.mxu0 %v3955_v0  ;;  %710 = vmatprep.mubr.bf16.mxu1 %v3955_v0  ;;  %v2987_v0 = vcombine.high %v156_v35, %v160_v36  ;;  %v3491_v17 = vld [vmem:[#allocation8 + $0x1e4] ss:$12 sps:$4 sm:$0xff]   ;;  %v3518_v35 = vld [vmem:[#allocation8 + $0x16c] ss:$12 sps:$4 sm:$0xff]  }
  0x7f   :  { %v3521_v36 = vld [vmem:[#allocation8 + $0x2ec] ss:$12 sps:$4 sm:$0xff]  }
  0x80   :  { %640 = vmatpush1.bf16.msra.mxu0 %v3008_v21  ;;  %681 = vmatpush1.bf16.msra.mxu1 %v3010_v22  ;;  %v3497_v21 = vld [vmem:[#allocation8 + $0x1cc] ss:$12 sps:$4 sm:$0xff]   ;;  %v3495_v22 = vld [vmem:[#allocation8 + $0x1c8] ss:$12 sps:$4 sm:$0xff]  }
  0x81   :  { %641 = vmatprep.subr.bf16.mxu0 %v3001_v23  ;;  %682 = vmatprep.subr.bf16.mxu1 %v3003_v25  ;;  %v3500_v23 = vld [vmem:[#allocation8 + $0x34] ss:$12 sps:$4 sm:$0xff]   ;;  %v3498_v25 = vld [vmem:[#allocation8 + $0x30] ss:$12 sps:$4 sm:$0xff]  }
  0x84   :  { %642 = vmatpush1.bf16.msra.mxu0 %v3000_v29  ;;  %683 = vmatpush1.bf16.msra.mxu1 %v3002_v30  ;;  %v3504_v29 = vld [vmem:[#allocation8 + $0x18] ss:$12 sps:$4 sm:$0xff]  }
  0x85   :  { %643 = vmatprep.subr.bf16.mxu0 %v2993_v31  ;;  %684 = vmatprep.subr.bf16.mxu1 %v2995_v33  ;;  %v3507_v30 = vld [vmem:[#allocation8 + $0x198] ss:$12 sps:$4 sm:$0xff]   ;;  %v3510_v33 = vld [vmem:[#allocation8] ss:$12 sps:$4 sm:$0xff]  }
  0x86   :  { %v3512_v31 = vld [vmem:[#allocation8 + $0x4] ss:$12 sps:$4 sm:$0xff]  }
  0x88   :  { %644 = vmatpush1.bf16.msra.mxu0 %v2992_v37  ;;  %685 = vmatpush1.bf16.msra.mxu1 %v2994_v38  ;;  %v3516_v37 = vld [vmem:[#allocation8 + $0x168] ss:$12 sps:$4 sm:$0xff]  }
  0x89   :  { %645 = vmatprep.subr.bf16.mxu0 %v2985_v39  ;;  %686 = vmatprep.subr.bf16.mxu1 %v2987_v0  ;;  %v3519_v38 = vld [vmem:[#allocation8 + $0x2e8] ss:$12 sps:$4 sm:$0xff]   ;;  %v3522_v0 = vld [vmem:[#allocation8 + $0x150] ss:$12 sps:$4 sm:$0xff]  }
  0x8a   :  { %v3524_v39 = vld [vmem:[#allocation8 + $0x154] ss:$12 sps:$4 sm:$0xff]  }
  0x8c   :  { %646 = vmatpush1.bf16.msra.mxu0 %v2984_v44  ;;  %687 = vmatpush1.bf16.msra.mxu1 %v2986_v45  ;;  %v3528_v44 = vld [vmem:[#allocation8 + $0x138] ss:$12 sps:$4 sm:$0xff]  }
  0x8d   :  { %647 = vmatprep.subr.bf16.mxu0 %v2977_v46  ;;  %688 = vmatprep.subr.bf16.mxu1 %v2979_v48  ;;  %v3531_v45 = vld [vmem:[#allocation8 + $0x2b8] ss:$12 sps:$4 sm:$0xff]   ;;  %v3534_v48 = vld [vmem:[#allocation8 + $0x120] ss:$12 sps:$4 sm:$0xff]  }
  0x8e   :  { %v3536_v46 = vld [vmem:[#allocation8 + $0x124] ss:$12 sps:$4 sm:$0xff]  }
  0x90   :  { %648 = vmatpush1.bf16.msra.mxu0 %v2976_v52  ;;  %689 = vmatpush1.bf16.msra.mxu1 %v2978_v53  ;;  %v3540_v52 = vld [vmem:[#allocation8 + $0x108] ss:$12 sps:$4 sm:$0xff]  }
  0x91   :  { %649 = vmatprep.subr.bf16.mxu0 %v2969_v54  ;;  %690 = vmatprep.subr.bf16.mxu1 %v2971_v56  ;;  %v3543_v53 = vld [vmem:[#allocation8 + $0x288] ss:$12 sps:$4 sm:$0xff]   ;;  %v3546_v56 = vld [vmem:[#allocation8 + $0xf0] ss:$12 sps:$4 sm:$0xff]  }
  0x92   :  { %v3548_v54 = vld [vmem:[#allocation8 + $0xf4] ss:$12 sps:$4 sm:$0xff]  }
  0x94   :  { %650 = vmatpush1.bf16.msra.mxu0 %v2968_v60  ;;  %691 = vmatpush1.bf16.msra.mxu1 %v2970_v61  ;;  %v3552_v60 = vld [vmem:[#allocation8 + $0xd8] ss:$12 sps:$4 sm:$0xff]  }
  0x95   :  { %651 = vmatprep.subr.bf16.mxu0 %v2961_v62  ;;  %692 = vmatprep.subr.bf16.mxu1 %v2963_v63  ;;  %v3555_v61 = vld [vmem:[#allocation8 + $0x258] ss:$12 sps:$4 sm:$0xff]  }
  0x96   :  { %v3560_v62 = vld [vmem:[#allocation8 + $0xc4] ss:$12 sps:$4 sm:$0xff]  }
  0x97   :  { %v3563_v63 = vld [vmem:[#allocation8 + $0x244] ss:$12 sps:$4 sm:$0xff]  }
  0x98   :  { %652 = vmatpush1.bf16.msra.mxu0 %v2960_v2  ;;  %693 = vmatpush1.bf16.msra.mxu1 %v2962_v4  ;;  %v3561_v2 = vld [vmem:[#allocation8 + $0x240] ss:$12 sps:$4 sm:$0xff]   ;;  %v3565_v4 = vld [vmem:[#allocation8 + $0x2f0] ss:$12 sps:$4 sm:$0xff]  }
  0x99   :  { %1392 = vmatprep.subr.bf16.mxu0 %v3470_v1  ;;  %1433 = vmatprep.subr.bf16.mxu1 %v3473_v3  ;;  %v3558_v1 = vld [vmem:[#allocation8 + $0xc0] ss:$12 sps:$4 sm:$0xff]   ;;  %v3564_v3 = vld [vmem:[#allocation8 + $0x170] ss:$12 sps:$4 sm:$0xff]  }
  0x9b   :  { %670 = vmatmul.mubr.bf16.vlgmr.msra.gmra.mxu0 %v4049_v12  ;;  %711 = vmatmul.mubr.bf16.vlgmr.msra.gmra.mxu1 %v4049_v12  ;;  %v3492_v12 = vld [vmem:[#allocation8 + $0x48] ss:$12 sps:$4 sm:$0xff]  }
  0x9c   :  { %1393 = vmatpush1.bf16.msra.mxu0 %v3468_v5  ;;  %1434 = vmatpush1.bf16.msra.mxu1 %v3471_v6  ;;  %v195_v5 = vlaneseq }
  0x9d   :  { %1394 = vmatprep.subr.bf16.mxu0 %v3476_v7  ;;  %1435 = vmatprep.subr.bf16.mxu1 %v3479_v8  ;;  %v4062_v8 = vld [vmem:[#allocation7] sm:$0xff] }
  0x9e   :  { %v4057_v6 = vshrl.u32 %v195_v5, 7 }
  0xa0   :  { %1395 = vmatpush1.bf16.msra.mxu0 %v3474_v9  ;;  %1436 = vmatpush1.bf16.msra.mxu1 %v3477_v10  ;;  %v4060_v7 = vsub.s32 0, %v4057_v6  ;;  %v4065_v9 = vsub.s32 2, %v4057_v6  ;;  %v4068_v10 = vsub.s32 1, %v4057_v6 }
  0xa1   :  { %1396 = vmatprep.subr.bf16.mxu0 %v3482_v11  ;;  %1437 = vmatprep.subr.bf16.mxu1 %v3485_v13  ;;  %v209_v11 = vsub.s32 3, %v4057_v6 }
  0xa2   :  { %v198_v13 = vrot.slane %v4062_v8, %v4060_v7 }
  0xa4   :  { %1397 = vmatpush1.bf16.msra.mxu0 %v3480_v14  ;;  %1438 = vmatpush1.bf16.msra.mxu1 %v3483_v15  ;;  %v206_v14 = vrot.slane %v4062_v8, %v4065_v9  ;;  %v202_v15 = vrot.slane %v4062_v8, %v4068_v10 }
  0xa5   :  { %1398 = vmatprep.subr.bf16.mxu0 %v3488_v16  ;;  %1439 = vmatprep.subr.bf16.mxu1 %v3491_v17  ;;  %v210_v17 = vrot.slane %v4062_v8, %v209_v11 }
  0xa8   :  { %1399 = vmatpush1.bf16.msra.mxu0 %v3486_v18  ;;  %1440 = vmatpush1.bf16.msra.mxu1 %v3489_v19 }
  0xa9   :  { %1400 = vmatprep.subr.bf16.mxu0 %v3494_v20  ;;  %1441 = vmatprep.subr.bf16.mxu1 %v3497_v21 }
  0xac   :  { %1401 = vmatpush1.bf16.msra.mxu0 %v3492_v12  ;;  %1442 = vmatpush1.bf16.msra.mxu1 %v3495_v22 }
  0xad   :  { %1402 = vmatprep.subr.bf16.mxu0 %v3500_v23  ;;  %1443 = vmatprep.subr.bf16.mxu1 %v3503_v24 }
  0xb0   :  { %1403 = vmatpush1.bf16.msra.mxu0 %v3498_v25  ;;  %1444 = vmatpush1.bf16.msra.mxu1 %v3501_v26 }
  0xb1   :  { %1404 = vmatprep.subr.bf16.mxu0 %v3506_v27  ;;  %1445 = vmatprep.subr.bf16.mxu1 %v3509_v28 }
  0xb4   :  { %1405 = vmatpush1.bf16.msra.mxu0 %v3504_v29  ;;  %1446 = vmatpush1.bf16.msra.mxu1 %v3507_v30 }
  0xb5   :  { %1406 = vmatprep.subr.bf16.mxu0 %v3512_v31  ;;  %1447 = vmatprep.subr.bf16.mxu1 %v3515_v32 }
  0xb8   :  { %1407 = vmatpush1.bf16.msra.mxu0 %v3510_v33  ;;  %1448 = vmatpush1.bf16.msra.mxu1 %v3513_v34  ;;  %v3566_v34 = vld [vmem:[#allocation8 + $0xb0] ss:$12 sps:$4 sm:$0xff]  }
  0xb9   :  { %1408 = vmatprep.subr.bf16.mxu0 %v3518_v35  ;;  %1449 = vmatprep.subr.bf16.mxu1 %v3521_v36 }
  0xbc   :  { %1409 = vmatpush2.bf16.msra.mxu0 %v3516_v37  ;;  %1450 = vmatpush2.bf16.msra.mxu1 %v3519_v38  ;;  %v3567_v37 = vld [vmem:[#allocation8 + $0x230] ss:$12 sps:$4 sm:$0xff]   ;;  %v3568_v38 = vld [vmem:[#allocation8 + $0x158] ss:$12 sps:$4 sm:$0xff]  }
  0xbd   :  { %1410 = vmatprep.subr.bf16.mxu0 %v3524_v39  ;;  %1451 = vmatprep.subr.bf16.mxu1 %v3527_v40  ;;  %v3569_v39 = vld [vmem:[#allocation8 + $0x2d8] ss:$12 sps:$4 sm:$0xff]  }
  0xbe   :  { %v3570_v40 = vld [vmem:[#allocation8 + $0x98] ss:$12 sps:$4 sm:$0xff]  }
  0xc0   :  { %1411 = vmatpush2.bf16.msra.mxu0 %v3522_v0  ;;  %1452 = vmatpush2.bf16.msra.mxu1 %v3525_v41  ;;  %v3571_v0 = vld [vmem:[#allocation8 + $0x218] ss:$12 sps:$4 sm:$0xff]   ;;  %v3572_v41 = vld [vmem:[#allocation8 + $0x140] ss:$12 sps:$4 sm:$0xff]  }
  0xc1   :  { %1412 = vmatprep.subr.bf16.mxu0 %v3530_v42  ;;  %1453 = vmatprep.subr.bf16.mxu1 %v3533_v43  ;;  %v3573_v42 = vld [vmem:[#allocation8 + $0x2c0] ss:$12 sps:$4 sm:$0xff]  }
  0xc2   :  { %v3574_v43 = vld [vmem:[#allocation8 + $0x80] ss:$12 sps:$4 sm:$0xff]  }
  0xc4   :  { %1413 = vmatpush2.bf16.msra.mxu0 %v3528_v44  ;;  %1454 = vmatpush2.bf16.msra.mxu1 %v3531_v45  ;;  %v3575_v44 = vld [vmem:[#allocation8 + $0x200] ss:$12 sps:$4 sm:$0xff]   ;;  %v3576_v45 = vld [vmem:[#allocation8 + $0x128] ss:$12 sps:$4 sm:$0xff]  }
  0xc5   :  { %1414 = vmatprep.subr.bf16.mxu0 %v3536_v46  ;;  %1455 = vmatprep.subr.bf16.mxu1 %v3539_v47  ;;  %v3577_v46 = vld [vmem:[#allocation8 + $0x2a8] ss:$12 sps:$4 sm:$0xff]  }
  0xc6   :  { %v3578_v47 = vld [vmem:[#allocation8 + $0x68] ss:$12 sps:$4 sm:$0xff]  }
  0xc8   :  { %1415 = vmatpush2.bf16.msra.mxu0 %v3534_v48  ;;  %1456 = vmatpush2.bf16.msra.mxu1 %v3537_v49  ;;  %v3579_v48 = vld [vmem:[#allocation8 + $0x1e8] ss:$12 sps:$4 sm:$0xff]   ;;  %v3580_v49 = vld [vmem:[#allocation8 + $0x110] ss:$12 sps:$4 sm:$0xff]  }
  0xc9   :  { %1416 = vmatprep.subr.bf16.mxu0 %v3542_v50  ;;  %1457 = vmatprep.subr.bf16.mxu1 %v3545_v51  ;;  %v3581_v50 = vld [vmem:[#allocation8 + $0x290] ss:$12 sps:$4 sm:$0xff]  }
  0xca   :  { %v3582_v51 = vld [vmem:[#allocation8 + $0x50] ss:$12 sps:$4 sm:$0xff]  }
  0xcc   :  { %1417 = vmatpush2.bf16.msra.mxu0 %v3540_v52  ;;  %1458 = vmatpush2.bf16.msra.mxu1 %v3543_v53  ;;  %v3583_v52 = vld [vmem:[#allocation8 + $0x1d0] ss:$12 sps:$4 sm:$0xff]   ;;  %v3584_v53 = vld [vmem:[#allocation8 + $0xf8] ss:$12 sps:$4 sm:$0xff]  }
  0xcd   :  { %1418 = vmatprep.subr.bf16.mxu0 %v3548_v54  ;;  %1459 = vmatprep.subr.bf16.mxu1 %v3551_v55  ;;  %v3585_v54 = vld [vmem:[#allocation8 + $0x278] ss:$12 sps:$4 sm:$0xff]  }
  0xce   :  { %v3586_v55 = vld [vmem:[#allocation8 + $0x38] ss:$12 sps:$4 sm:$0xff]  }
  0xd0   :  { %1419 = vmatpush2.bf16.msra.mxu0 %v3546_v56  ;;  %1460 = vmatpush2.bf16.msra.mxu1 %v3549_v57  ;;  %v217_v56 = vsub.s32 5, %v4057_v6  ;;  %v3587_v57 = vld [vmem:[#allocation8 + $0x1b8] ss:$12 sps:$4 sm:$0xff]  }
  0xd1   :  { %1420 = vmatprep.subr.bf16.mxu0 %v3554_v58  ;;  %1461 = vmatprep.subr.bf16.mxu1 %v3557_v59  ;;  %v3588_v58 = vld [vmem:[#allocation8 + $0xe0] ss:$12 sps:$4 sm:$0xff]   ;;  %v225_v59 = vsub.s32 7, %v4057_v6 }
  0xd4   :  { %1421 = vmatpush2.bf16.msra.mxu0 %v3552_v60  ;;  %1462 = vmatpush2.bf16.msra.mxu1 %v3555_v61  ;;  %v3589_v60 = vld [vmem:[#allocation8 + $0x260] ss:$12 sps:$4 sm:$0xff]  }
  0xd5   :  { %1422 = vmatprep.subr.bf16.mxu0 %v3560_v62  ;;  %1463 = vmatprep.subr.bf16.mxu1 %v3563_v63  ;;  %v3590_v61 = vld [vmem:[#allocation8 + $0x20] ss:$12 sps:$4 sm:$0xff]   ;;  %v218_v62 = vrot.slane %v4062_v8, %v217_v56 }
  0xd6   :  { %v3591_v63 = vld [vmem:[#allocation8 + $0x1a0] ss:$12 sps:$4 sm:$0xff]  }
  0xd7   :  { %v3646_v56 = vld [vmem:[#allocation10 + $0x16c] ss:$12 sps:$4 sm:$0xff]  }
  0xd8   :  { %1423 = vmatpush2.bf16.msra.mxu0 %v3558_v1  ;;  %1464 = vmatpush2.bf16.msra.mxu1 %v3561_v2  ;;  %v3592_v1 = vld [vmem:[#allocation8 + $0xc8] ss:$12 sps:$4 sm:$0xff]  }
  0xd9   :  { %3261 = vmatprep.subr.bf16.mxu0 %v3564_v3  ;;  %3283 = vmatprep.subr.bf16.mxu1 %v3565_v4  ;;  %v226_v3 = vrot.slane %v4062_v8, %v225_v59  ;;  %v3593_v4 = vld [vmem:[#allocation8 + $0x248] ss:$12 sps:$4 sm:$0xff]  }
  0xda   :  { %v3647_v59 = vld [vmem:[#allocation10 + $0x2e8] ss:$12 sps:$4 sm:$0xff]  }
 0x13b   :  { %v589_v16 = vpop.f32.mrf.mxu0  ;;  %v630_v19 = vpop.f32.mrf.mxu1 }
 0x13c   :  { %v590_v18 = vadd.f32 %v589_v16, %v198_v13  ;;  %v631_v20 = vadd.f32 %v630_v19, %v206_v14  ;;  %v3594_v13 = vld [vmem:[#allocation8 + $0x8] ss:$12 sps:$4 sm:$0xff]  }
 0x13d   :  { %v591_v21 = vpop.f32.mrf.mxu0  ;;  %v632_v22 = vpop.f32.mrf.mxu1  ;;  %v3595_v16 = vld [vmem:[#allocation8 + $0x188] ss:$12 sps:$4 sm:$0xff]  }
 0x13e   :  { %v592_v12 = vadd.f32 %v591_v21, %v202_v15  ;;  %v719_v23 = vmax.f32 %v590_v18, 0.0  ;;  %v721_v24 = vmax.f32 %v631_v20, 0.0  ;;  %v633_v25 = vadd.f32 %v632_v22, %v210_v17  ;;  %v3598_v17 = vld [vmem:[#allocation10 + $0xac] ss:$12 sps:$4 sm:$0xff]  }
 0x13f   :  { %v593_v26 = vpop.f32.mrf.mxu0  ;;  %v634_v28 = vpop.f32.mrf.mxu1  ;;  %v3601_v20 = vld [vmem:[#allocation10 + $0x22c] ss:$12 sps:$4 sm:$0xff]  }
 0x140   :  { %v720_v27 = vmax.f32 %v592_v12, 0.0  ;;  %v722_v29 = vmax.f32 %v633_v25, 0.0  ;;  %v4078_v31 = vpack.c.bf16 %v721_v24, %v721_v24  ;;  %v4080_v35 = vpack.c.bf16 %v719_v23, %v719_v23  ;;  %v3596_v24 = vld [vmem:[#allocation10 + $0xa8] ss:$12 sps:$4 sm:$0xff]  }
 0x141   :  { %v594_v30 = vpop.f32.mrf.mxu0  ;;  %v635_v33 = vpop.f32.mrf.mxu1  ;;  %v3599_v26 = vld [vmem:[#allocation10 + $0x228] ss:$12 sps:$4 sm:$0xff]  }
 0x142   :  { %v728_v32 = vpack.c.bf16 %v720_v27, %v720_v27  ;;  %v730_v36 = vpack.c.bf16 %v722_v29, %v722_v29  ;;  %v3604_v27 = vld [vmem:[#allocation10 + $0x94] ss:$12 sps:$4 sm:$0xff]   ;;  %v3605_v33 = vld [vmem:[#allocation10 + $0x210] ss:$12 sps:$4 sm:$0xff]  }
 0x143   :  { %v3607_v28 = vld [vmem:[#allocation10 + $0x214] ss:$12 sps:$4 sm:$0xff]  }
 0x144   :  { %1424 = vmatprep.mubr.bf16.mxu0 %v728_v32  ;;  %1465 = vmatprep.mubr.bf16.mxu1 %v730_v36 }
 0x145   :  { %1425 = vmatmul.mubr.bf16.vlgmr.msra.gmra.mxu0 %v4080_v35  ;;  %1466 = vmatmul.mubr.bf16.vlgmr.msra.gmra.mxu1 %v4078_v31 }
 0x146   :  { %3262 = vmatpush3.bf16.msra.mxu0 %v3566_v34  ;;  %3284 = vmatpush3.bf16.msra.mxu1 %v3567_v37  ;;  %v3610_v34 = vld [vmem:[#allocation10 + $0x7c] ss:$12 sps:$4 sm:$0xff]   ;;  %v3608_v37 = vld [vmem:[#allocation10 + $0x78] ss:$12 sps:$4 sm:$0xff]  }
 0x147   :  { %1506 = vmatprep.mubr.bf16.mxu0 %v728_v32  ;;  %1546 = vmatprep.mubr.bf16.mxu1 %v730_v36  ;;  %v3602_v32 = vld [vmem:[#allocation10 + $0x90] ss:$12 sps:$4 sm:$0xff]  }
 0x148   :  { %3263 = vmatprep.subr.bf16.mxu0 %v3568_v38  ;;  %3285 = vmatprep.subr.bf16.mxu1 %v3569_v39  ;;  %v3613_v36 = vld [vmem:[#allocation10 + $0x1fc] ss:$12 sps:$4 sm:$0xff]   ;;  %v3616_v38 = vld [vmem:[#allocation10 + $0x64] ss:$12 sps:$4 sm:$0xff]   ;;  %v3614_v39 = vld [vmem:[#allocation10 + $0x60] ss:$12 sps:$4 sm:$0xff]  }
 0x14a   :  { %3264 = vmatpush3.bf16.msra.mxu0 %v3570_v40  ;;  %3286 = vmatpush3.bf16.msra.mxu1 %v3571_v0  ;;  %v3617_v40 = vld [vmem:[#allocation10 + $0x1e0] ss:$12 sps:$4 sm:$0xff]  }
 0x14b   :  { %3265 = vmatprep.subr.bf16.mxu0 %v3572_v41  ;;  %3287 = vmatprep.subr.bf16.mxu1 %v3573_v42  ;;  %v3622_v0 = vld [vmem:[#allocation10 + $0x4c] ss:$12 sps:$4 sm:$0xff]   ;;  %v3620_v42 = vld [vmem:[#allocation10 + $0x48] ss:$12 sps:$4 sm:$0xff]  }
 0x14c   :  { %v3625_v41 = vld [vmem:[#allocation10 + $0x1cc] ss:$12 sps:$4 sm:$0xff]  }
 0x14e   :  { %3266 = vmatpush3.bf16.msra.mxu0 %v3574_v43  ;;  %3288 = vmatpush3.bf16.msra.mxu1 %v3575_v44  ;;  %v3623_v43 = vld [vmem:[#allocation10 + $0x1c8] ss:$12 sps:$4 sm:$0xff]  }
 0x14f   :  { %3267 = vmatprep.subr.bf16.mxu0 %v3576_v45  ;;  %3289 = vmatprep.subr.bf16.mxu1 %v3577_v46  ;;  %v3628_v44 = vld [vmem:[#allocation10 + $0x34] ss:$12 sps:$4 sm:$0xff]   ;;  %v3626_v46 = vld [vmem:[#allocation10 + $0x30] ss:$12 sps:$4 sm:$0xff]  }
 0x150   :  { %v3631_v45 = vld [vmem:[#allocation10 + $0x1b4] ss:$12 sps:$4 sm:$0xff]  }
 0x152   :  { %3268 = vmatpush3.bf16.msra.mxu0 %v3578_v47  ;;  %3290 = vmatpush3.bf16.msra.mxu1 %v3579_v48  ;;  %v3629_v47 = vld [vmem:[#allocation10 + $0x1b0] ss:$12 sps:$4 sm:$0xff]  }
 0x153   :  { %3269 = vmatprep.subr.bf16.mxu0 %v3580_v49  ;;  %3291 = vmatprep.subr.bf16.mxu1 %v3581_v50  ;;  %v3634_v48 = vld [vmem:[#allocation10 + $0x1c] ss:$12 sps:$4 sm:$0xff]   ;;  %v3632_v50 = vld [vmem:[#allocation10 + $0x18] ss:$12 sps:$4 sm:$0xff]  }
 0x154   :  { %v3637_v49 = vld [vmem:[#allocation10 + $0x19c] ss:$12 sps:$4 sm:$0xff]  }
 0x156   :  { %3270 = vmatpush3.bf16.msra.mxu0 %v3582_v51  ;;  %3292 = vmatpush3.bf16.msra.mxu1 %v3583_v52  ;;  %v3635_v51 = vld [vmem:[#allocation10 + $0x198] ss:$12 sps:$4 sm:$0xff]  }
 0x157   :  { %3271 = vmatprep.subr.bf16.mxu0 %v3584_v53  ;;  %3293 = vmatprep.subr.bf16.mxu1 %v3585_v54  ;;  %v3640_v52 = vld [vmem:[#allocation10 + $0x4] ss:$12 sps:$4 sm:$0xff]   ;;  %v3638_v54 = vld [vmem:[#allocation10] ss:$12 sps:$4 sm:$0xff]  }
 0x158   :  { %v3643_v53 = vld [vmem:[#allocation10 + $0x184] ss:$12 sps:$4 sm:$0xff]  }
 0x15a   :  { %3272 = vmatpush3.bf16.msra.mxu0 %v3586_v55  ;;  %3294 = vmatpush3.bf16.msra.mxu1 %v3587_v57  ;;  %v3641_v55 = vld [vmem:[#allocation10 + $0x180] ss:$12 sps:$4 sm:$0xff]  }
 0x15b   :  { %3273 = vmatprep.subr.bf16.mxu0 %v3588_v58  ;;  %v4087_v2 = vpop.f32.mrf.mxu0  ;;  %3295 = vmatprep.subr.bf16.mxu1 %v3589_v60  ;;  %v4090_v5 = vpop.f32.mrf.mxu1  ;;  %v3649_v57 = vld [vmem:[#allocation10 + $0x2ec] ss:$12 sps:$4 sm:$0xff]   ;;  %v3644_v58 = vld [vmem:[#allocation10 + $0x168] ss:$12 sps:$4 sm:$0xff]  }
 0x15c   :  { %v3652_v60 = vld [vmem:[#allocation10 + $0x154] ss:$12 sps:$4 sm:$0xff]  }
 0x15d   :  { %v673_v11 = vpop.f32.mrf.mxu0  ;;  %v714_v15 = vpop.f32.mrf.mxu1 }
 0x15e   :  { %3274 = vmatpush3.bf16.msra.mxu0 %v3590_v61  ;;  %v674_v14 = vadd.f32 %v673_v11, %v218_v62  ;;  %3296 = vmatpush3.bf16.msra.mxu1 %v3591_v63  ;;  %v715_v19 = vadd.f32 %v714_v15, %v226_v3  ;;  %v3655_v61 = vld [vmem:[#allocation10 + $0x2d4] ss:$12 sps:$4 sm:$0xff]   ;;  %v3650_v62 = vld [vmem:[#allocation10 + $0x150] ss:$12 sps:$4 sm:$0xff]   ;;  %v3659_v11 = vld [vmem:[#allocation10 + $0x2b8] ss:$12 sps:$4 sm:$0xff]  }
 0x15f   :  { %3275 = vmatprep.subr.bf16.mxu0 %v3592_v1  ;;  %v675_v18 = vpop.f32.mrf.mxu0  ;;  %3297 = vmatprep.subr.bf16.mxu1 %v3593_v4  ;;  %v716_v12 = vpop.f32.mrf.mxu1  ;;  %v3653_v63 = vld [vmem:[#allocation10 + $0x2d0] ss:$12 sps:$4 sm:$0xff]   ;;  %v3656_v4 = vld [vmem:[#allocation10 + $0x138] ss:$12 sps:$4 sm:$0xff]   ;;  %v3662_v15 = vld [vmem:[#allocation10 + $0x120] ss:$12 sps:$4 sm:$0xff]  }
 0x160   :  { %v724_v21 = vmax.f32 %v674_v14, 0.0  ;;  %v726_v22 = vmax.f32 %v715_v19, 0.0  ;;  %v3658_v1 = vld [vmem:[#allocation10 + $0x13c] ss:$12 sps:$4 sm:$0xff]   ;;  %v3667_v14 = vld [vmem:[#allocation10 + $0x2a4] ss:$12 sps:$4 sm:$0xff]  }
 0x161   :  { %v676_v23 = vpop.f32.mrf.mxu0  ;;  %v717_v25 = vpop.f32.mrf.mxu1  ;;  %v3661_v3 = vld [vmem:[#allocation10 + $0x2bc] ss:$12 sps:$4 sm:$0xff]   ;;  %v3673_v18 = vld [vmem:[#allocation10 + $0x28c] ss:$12 sps:$4 sm:$0xff]   ;;  %v213_v12 = vsub.s32 4, %v4057_v6 }
 0x162   :  { %3276 = vmatpush3.bf16.msra.mxu0 %v3594_v13  ;;  %3298 = vmatpush3.bf16.msra.mxu1 %v3595_v16  ;;  %v4092_v29 = vpack.c.bf16 %v724_v21, %v724_v21  ;;  %v4095_v30 = vpack.c.bf16 %v726_v22, %v726_v22  ;;  %v3664_v13 = vld [vmem:[#allocation10 + $0x124] ss:$12 sps:$4 sm:$0xff]   ;;  %v3665_v16 = vld [vmem:[#allocation10 + $0x2a0] ss:$12 sps:$4 sm:$0xff]   ;;  %v3668_v19 = vld [vmem:[#allocation10 + $0x108] ss:$12 sps:$4 sm:$0xff]  }
 0x163   :  { %2217 = vmatprep.subr.bf16.mxu0 %v3598_v17  ;;  %2258 = vmatprep.subr.bf16.mxu1 %v3601_v20  ;;  %v3670_v17 = vld [vmem:[#allocation10 + $0x10c] ss:$12 sps:$4 sm:$0xff]   ;;  %v221_v20 = vsub.s32 6, %v4057_v6  ;;  %v3671_v21 = vld [vmem:[#allocation10 + $0x288] ss:$12 sps:$4 sm:$0xff]  }
 0x164   :  { %v3676_v22 = vld [vmem:[#allocation10 + $0xf4] ss:$12 sps:$4 sm:$0xff]   ;;  %v3674_v25 = vld [vmem:[#allocation10 + $0xf0] ss:$12 sps:$4 sm:$0xff]  }
 0x165   :  { %1507 = vmatmul.mubr.bf16.vlgmr.msra.gmra.mxu0 %v4080_v35  ;;  %1547 = vmatmul.mubr.bf16.vlgmr.msra.gmra.mxu1 %v4078_v31  ;;  %v3611_v35 = vld [vmem:[#allocation10 + $0x1f8] ss:$12 sps:$4 sm:$0xff]   ;;  %v3679_v23 = vld [vmem:[#allocation10 + $0x274] ss:$12 sps:$4 sm:$0xff]  }
 0x166   :  { %2218 = vmatpush1.bf16.msra.mxu0 %v3596_v24  ;;  %2259 = vmatpush1.bf16.msra.mxu1 %v3599_v26  ;;  %v3619_v31 = vld [vmem:[#allocation10 + $0x1e4] ss:$12 sps:$4 sm:$0xff]   ;;  %v222_v24 = vrot.slane %v4062_v8, %v221_v20  ;;  %v214_v26 = vrot.slane %v4062_v8, %v213_v12  ;;  %v3686_v8 = vld [vmem:[#allocation10 + $0xc0] ss:$12 sps:$4 sm:$0xff]   ;;  %v3732_v12 = vld [vmem:[#allocation13 + $0x58] sm:$0xff]  }
 0x167   :  { %2219 = vmatprep.subr.bf16.mxu0 %v3604_v27  ;;  %2260 = vmatprep.subr.bf16.mxu1 %v3607_v28  ;;  %v3677_v27 = vld [vmem:[#allocation10 + $0x270] ss:$12 sps:$4 sm:$0xff]   ;;  %v3730_v20 = vld [vmem:[#allocation13 + $0x60] sm:$0xff]  }
 0x168   :  { %2249 = vmatprep.mubr.bf16.mxu0 %v4092_v29  ;;  %2290 = vmatprep.mubr.bf16.mxu1 %v4095_v30  ;;  %v3682_v28 = vld [vmem:[#allocation10 + $0xdc] ss:$12 sps:$4 sm:$0xff]   ;;  %v672_v6 = vadd.f32 %v4087_v2, %v214_v26 }
 0x169   :  { %v3694_v2 = vld [vmem:[#allocation10 + $0xb0] ss:$12 sps:$4 sm:$0xff]   ;;  %v3737_v26 = vld [vmem:[#allocation13 + $0x8] sm:$0xff]  }
 0x16a   :  { %2220 = vmatpush1.bf16.msra.mxu0 %v3602_v32  ;;  %2261 = vmatpush1.bf16.msra.mxu1 %v3605_v33  ;;  %v3685_v32 = vld [vmem:[#allocation10 + $0x25c] ss:$12 sps:$4 sm:$0xff]   ;;  %v713_v33 = vadd.f32 %v4090_v5, %v222_v24  ;;  %v3735_v24 = vld [vmem:[#allocation13 + $0x10] sm:$0xff]  }
 0x16b   :  { %2221 = vmatprep.subr.bf16.mxu0 %v3610_v34  ;;  %2262 = vmatprep.subr.bf16.mxu1 %v3613_v36  ;;  %v3680_v34 = vld [vmem:[#allocation10 + $0xd8] ss:$12 sps:$4 sm:$0xff]   ;;  %v3693_v5 = vld [vmem:[#allocation10 + $0x2f0] ss:$12 sps:$4 sm:$0xff]  }
 0x16c   :  { %v3683_v36 = vld [vmem:[#allocation10 + $0x258] ss:$12 sps:$4 sm:$0xff]  }
 0x16e   :  { %2222 = vmatpush1.bf16.msra.mxu0 %v3608_v37  ;;  %2263 = vmatpush1.bf16.msra.mxu1 %v3611_v35  ;;  %v3688_v37 = vld [vmem:[#allocation10 + $0xc4] ss:$12 sps:$4 sm:$0xff]  }
 0x16f   :  { %2223 = vmatprep.subr.bf16.mxu0 %v3616_v38  ;;  %2264 = vmatprep.subr.bf16.mxu1 %v3619_v31  ;;  %v3691_v35 = vld [vmem:[#allocation10 + $0x244] ss:$12 sps:$4 sm:$0xff]   ;;  %v725_v38 = vmax.f32 %v713_v33, 0.0  ;;  %v723_v31 = vmax.f32 %v672_v6, 0.0  ;;  %v3956_v33 = vmov 0.0  }
 0x170   :  { %v3745_v6 = vld [vmem:[#allocation13 + $0xb0] sm:$0xff]  }
 0x172   :  { %2224 = vmatpush1.bf16.msra.mxu0 %v3614_v39  ;;  %2265 = vmatpush1.bf16.msra.mxu1 %v3617_v40  ;;  %v3689_v39 = vld [vmem:[#allocation10 + $0x240] ss:$12 sps:$4 sm:$0xff]   ;;  %v3692_v40 = vld [vmem:[#allocation10 + $0x170] ss:$12 sps:$4 sm:$0xff]  }
 0x173   :  { %2225 = vmatprep.subr.bf16.mxu0 %v3622_v0  ;;  %2266 = vmatprep.subr.bf16.mxu1 %v3625_v41  ;;  %v4106_v0 = vpack.c.bf16 %v725_v38, %v725_v38  ;;  %v4108_v41 = vpack.c.bf16 %v723_v31, %v723_v31 }
 0x176   :  { %2226 = vmatpush1.bf16.msra.mxu0 %v3620_v42  ;;  %2267 = vmatpush1.bf16.msra.mxu1 %v3623_v43  ;;  %v3695_v42 = vld [vmem:[#allocation10 + $0x230] ss:$12 sps:$4 sm:$0xff]   ;;  %v3696_v43 = vld [vmem:[#allocation10 + $0x158] ss:$12 sps:$4 sm:$0xff]  }
 0x177   :  { %2227 = vmatprep.subr.bf16.mxu0 %v3628_v44  ;;  %2268 = vmatprep.subr.bf16.mxu1 %v3631_v45  ;;  %v3697_v44 = vld [vmem:[#allocation10 + $0x2d8] ss:$12 sps:$4 sm:$0xff]  }
 0x178   :  { %v3698_v45 = vld [vmem:[#allocation10 + $0x98] ss:$12 sps:$4 sm:$0xff]  }
 0x17a   :  { %2228 = vmatpush1.bf16.msra.mxu0 %v3626_v46  ;;  %2269 = vmatpush1.bf16.msra.mxu1 %v3629_v47  ;;  %v3699_v46 = vld [vmem:[#allocation10 + $0x218] ss:$12 sps:$4 sm:$0xff]   ;;  %v3700_v47 = vld [vmem:[#allocation10 + $0x140] ss:$12 sps:$4 sm:$0xff]  }
 0x17b   :  { %2229 = vmatprep.subr.bf16.mxu0 %v3634_v48  ;;  %2270 = vmatprep.subr.bf16.mxu1 %v3637_v49  ;;  %v3701_v48 = vld [vmem:[#allocation10 + $0x2c0] ss:$12 sps:$4 sm:$0xff]  }
 0x17c   :  { %v3702_v49 = vld [vmem:[#allocation10 + $0x80] ss:$12 sps:$4 sm:$0xff]  }
 0x17e   :  { %2230 = vmatpush1.bf16.msra.mxu0 %v3632_v50  ;;  %2271 = vmatpush1.bf16.msra.mxu1 %v3635_v51  ;;  %v3703_v50 = vld [vmem:[#allocation10 + $0x200] ss:$12 sps:$4 sm:$0xff]   ;;  %v3704_v51 = vld [vmem:[#allocation10 + $0x128] ss:$12 sps:$4 sm:$0xff]  }
 0x17f   :  { %2231 = vmatprep.subr.bf16.mxu0 %v3640_v52  ;;  %2272 = vmatprep.subr.bf16.mxu1 %v3643_v53  ;;  %v3705_v52 = vld [vmem:[#allocation10 + $0x2a8] ss:$12 sps:$4 sm:$0xff]  }
 0x180   :  { %v3706_v53 = vld [vmem:[#allocation10 + $0x68] ss:$12 sps:$4 sm:$0xff]  }
 0x182   :  { %2232 = vmatpush1.bf16.msra.mxu0 %v3638_v54  ;;  %2273 = vmatpush1.bf16.msra.mxu1 %v3641_v55  ;;  %v3708_v54 = vld [vmem:[#allocation10 + $0x110] ss:$12 sps:$4 sm:$0xff]  }
 0x183   :  { %2233 = vmatprep.subr.bf16.mxu0 %v3646_v56  ;;  %2274 = vmatprep.subr.bf16.mxu1 %v3649_v57  ;;  %v3709_v55 = vld [vmem:[#allocation10 + $0x290] ss:$12 sps:$4 sm:$0xff]   ;;  %v3712_v57 = vld [vmem:[#allocation10 + $0xf8] ss:$12 sps:$4 sm:$0xff]  }
 0x184   :  { %v3711_v56 = vld [vmem:[#allocation10 + $0x1d0] ss:$12 sps:$4 sm:$0xff]  }
 0x186   :  { %2234 = vmatpush2.bf16.msra.mxu0 %v3644_v58  ;;  %2275 = vmatpush2.bf16.msra.mxu1 %v3647_v59  ;;  %v3713_v58 = vld [vmem:[#allocation10 + $0x278] ss:$12 sps:$4 sm:$0xff]  }
 0x187   :  { %2235 = vmatprep.subr.bf16.mxu0 %v3652_v60  ;;  %2276 = vmatprep.subr.bf16.mxu1 %v3655_v61  ;;  %v3714_v59 = vld [vmem:[#allocation10 + $0x38] ss:$12 sps:$4 sm:$0xff]   ;;  %v3716_v61 = vld [vmem:[#allocation10 + $0xe0] ss:$12 sps:$4 sm:$0xff]  }
 0x188   :  { %v3715_v60 = vld [vmem:[#allocation10 + $0x1b8] ss:$12 sps:$4 sm:$0xff]  }
 0x18a   :  { %2236 = vmatpush2.bf16.msra.mxu0 %v3650_v62  ;;  %2277 = vmatpush2.bf16.msra.mxu1 %v3653_v63  ;;  %v3717_v62 = vld [vmem:[#allocation10 + $0x260] ss:$12 sps:$4 sm:$0xff]  }
 0x18b   :  { %2237 = vmatprep.subr.bf16.mxu0 %v3658_v1  ;;  %2278 = vmatprep.subr.bf16.mxu1 %v3661_v3  ;;  %v3718_v63 = vld [vmem:[#allocation10 + $0x20] ss:$12 sps:$4 sm:$0xff]   ;;  %v3720_v3 = vld [vmem:[#allocation10 + $0xc8] ss:$12 sps:$4 sm:$0xff]  }
 0x18c   :  { %v3719_v1 = vld [vmem:[#allocation10 + $0x1a0] ss:$12 sps:$4 sm:$0xff]  }
 0x18e   :  { %2238 = vmatpush2.bf16.msra.mxu0 %v3656_v4  ;;  %2279 = vmatpush2.bf16.msra.mxu1 %v3659_v11  ;;  %v3721_v4 = vld [vmem:[#allocation10 + $0x248] ss:$12 sps:$4 sm:$0xff]  }
 0x18f   :  { %2239 = vmatprep.subr.bf16.mxu0 %v3664_v13  ;;  %2280 = vmatprep.subr.bf16.mxu1 %v3667_v14  ;;  %v3722_v11 = vld [vmem:[#allocation10 + $0x8] ss:$12 sps:$4 sm:$0xff]   ;;  %v3724_v14 = vld [vmem:[#allocation13 + $0x78] sm:$0xff]  }
 0x190   :  { %v3723_v13 = vld [vmem:[#allocation10 + $0x188] ss:$12 sps:$4 sm:$0xff]  }
 0x192   :  { %2240 = vmatpush2.bf16.msra.mxu0 %v3662_v15  ;;  %2281 = vmatpush2.bf16.msra.mxu1 %v3665_v16  ;;  %v3725_v15 = vld [vmem:[#allocation13 + $0x38] sm:$0xff]   ;;  %v3726_v16 = vld [vmem:[#allocation13 + $0x70] sm:$0xff]  }
 0x193   :  { %2241 = vmatprep.subr.bf16.mxu0 %v3670_v17  ;;  %2282 = vmatprep.subr.bf16.mxu1 %v3673_v18  ;;  %v3727_v17 = vld [vmem:[#allocation13 + $0x30] sm:$0xff]   ;;  %v3728_v18 = vld [vmem:[#allocation13 + $0x68] sm:$0xff]  }
 0x196   :  { %2242 = vmatpush2.bf16.msra.mxu0 %v3668_v19  ;;  %2283 = vmatpush2.bf16.msra.mxu1 %v3671_v21  ;;  %v3729_v19 = vld [vmem:[#allocation13 + $0x28] sm:$0xff]   ;;  %v3731_v21 = vld [vmem:[#allocation13 + $0x20] sm:$0xff]  }
 0x197   :  { %2243 = vmatprep.subr.bf16.mxu0 %v3676_v22  ;;  %2284 = vmatprep.subr.bf16.mxu1 %v3679_v23  ;;  %v3733_v22 = vld [vmem:[#allocation13 + $0x18] sm:$0xff]   ;;  %v3734_v23 = vld [vmem:[#allocation13 + $0x50] sm:$0xff]  }
 0x19a   :  { %2244 = vmatpush2.bf16.msra.mxu0 %v3674_v25  ;;  %2285 = vmatpush2.bf16.msra.mxu1 %v3677_v27  ;;  %v3736_v25 = vld [vmem:[#allocation13 + $0x48] sm:$0xff]   ;;  %v3738_v27 = vld [vmem:[#allocation13 + $0x40] sm:$0xff]  }
 0x19b   :  { %2245 = vmatprep.subr.bf16.mxu0 %v3682_v28  ;;  %2286 = vmatprep.subr.bf16.mxu1 %v3685_v32  ;;  %v3739_v28 = vld [vmem:[#allocation13] sm:$0xff]   ;;  %v3740_v32 = vld [vmem:[#allocation11 + $0x78] sm:$0xff]  }
 0x19e   :  { %2246 = vmatpush2.bf16.msra.mxu0 %v3680_v34  ;;  %2287 = vmatpush2.bf16.msra.mxu1 %v3683_v36  ;;  %v3742_v34 = vld [vmem:[#allocation13 + $0xb8] sm:$0xff]   ;;  %v3748_v36 = vld [vmem:[#allocation13 + $0xa8] sm:$0xff]  }
 0x19f   :  { %2247 = vmatprep.subr.bf16.mxu0 %v3688_v37  ;;  %2288 = vmatprep.subr.bf16.mxu1 %v3691_v35  ;;  %v3751_v37 = vld [vmem:[#allocation13 + $0xa0] sm:$0xff]   ;;  %v863_v35 = vld [vmem:[%s4164_s4] sm:$0x7] }
 0x1a0   :  { %v868_v38 = vrot.slane %v863_v35, %v4060_v7  ;;  %v872_v31 = vrot.slane %v863_v35, %v4068_v10 }
 0x1a2   :  { %2248 = vmatpush2.bf16.msra.mxu0 %v3686_v8  ;;  %2289 = vmatpush2.bf16.msra.mxu1 %v3689_v39  ;;  %v3754_v8 = vld [vmem:[#allocation13 + $0x98] sm:$0xff]  }
 0x1a3   :  { %3305 = vmatprep.subr.bf16.mxu0 %v3692_v40  ;;  %3327 = vmatprep.subr.bf16.mxu1 %v3693_v5 }
 0x1a5   :  { %2250 = vmatmul.mubr.bf16.vlgmr.msra.gmra.mxu0 %v4108_v41  ;;  %2291 = vmatmul.mubr.bf16.vlgmr.msra.gmra.mxu1 %v4106_v0 }
 0x1a6   :  { %3306 = vmatpush3.bf16.msra.mxu0 %v3694_v2  ;;  %2331 = vmatprep.mubr.bf16.mxu0 %v4092_v29  ;;  %v3707_v29 = vld [vmem:[#allocation10 + $0x1e8] ss:$12 sps:$4 sm:$0xff]  }
 0x1a7   :  { %3328 = vmatpush3.bf16.msra.mxu1 %v3695_v42  ;;  %2371 = vmatprep.mubr.bf16.mxu1 %v4095_v30  ;;  %v3710_v30 = vld [vmem:[#allocation10 + $0x50] ss:$12 sps:$4 sm:$0xff]  }
 0x1a8   :  { %3307 = vmatprep.subr.bf16.mxu0 %v3696_v43  ;;  %3329 = vmatprep.subr.bf16.mxu1 %v3697_v44 }
 0x1aa   :  { %3308 = vmatpush3.bf16.msra.mxu0 %v3698_v45 }
 0x1ab   :  { %3330 = vmatpush3.bf16.msra.mxu1 %v3699_v46  ;;  %3309 = vmatprep.subr.bf16.mxu0 %v3700_v47  ;;  %v3760_v47 = vld [vmem:[#allocation13 + $0x88] sm:$0xff]  }
 0x1ac   :  { %3331 = vmatprep.subr.bf16.mxu1 %v3701_v48 }
 0x1ae   :  { %3310 = vmatpush3.bf16.msra.mxu0 %v3702_v49 }
 0x1af   :  { %3332 = vmatpush3.bf16.msra.mxu1 %v3703_v50  ;;  %3311 = vmatprep.subr.bf16.mxu0 %v3704_v51  ;;  %v3763_v50 = vld [vmem:[#allocation13 + $0x80] sm:$0xff]  }
 0x1b0   :  { %3333 = vmatprep.subr.bf16.mxu1 %v3705_v52 }
 0x1b2   :  { %3312 = vmatpush3.bf16.msra.mxu0 %v3706_v53  ;;  %v876_v53 = vrot.slane %v863_v35, %v4065_v9  ;;  %v3755_v35 = vld [vmem:[#allocation11 + $0x50] sm:$0xff]  }
 0x1b3   :  { %3334 = vmatpush3.bf16.msra.mxu1 %v3707_v29  ;;  %3313 = vmatprep.subr.bf16.mxu0 %v3708_v54 }
 0x1b4   :  { %3335 = vmatprep.subr.bf16.mxu1 %v3709_v55 }
 0x1b6   :  { %3314 = vmatpush3.bf16.msra.mxu0 %v3710_v30 }
 0x1b7   :  { %3336 = vmatpush3.bf16.msra.mxu1 %v3711_v56  ;;  %3315 = vmatprep.subr.bf16.mxu0 %v3712_v57 }
 0x1b8   :  { %3337 = vmatprep.subr.bf16.mxu1 %v3713_v58 }
 0x1ba   :  { %3316 = vmatpush3.bf16.msra.mxu0 %v3714_v59 }
 0x1bb   :  { %3338 = vmatpush3.bf16.msra.mxu1 %v3715_v60  ;;  %3317 = vmatprep.subr.bf16.mxu0 %v3716_v61 }
 0x1bc   :  { %3339 = vmatprep.subr.bf16.mxu1 %v3717_v62  ;;  %v1688_v62 = vld [vmem:[%s4166_s6] sm:$0x7] }
 0x1be   :  { %3318 = vmatpush3.bf16.msra.mxu0 %v3718_v63  ;;  %v1693_v63 = vrot.slane %v1688_v62, %v4060_v7 }
 0x1bf   :  { %3340 = vmatpush3.bf16.msra.mxu1 %v3719_v1  ;;  %3319 = vmatprep.subr.bf16.mxu0 %v3720_v3  ;;  %v1697_v1 = vrot.slane %v1688_v62, %v4068_v10 }
 0x1c0   :  { %3341 = vmatprep.subr.bf16.mxu1 %v3721_v4 }
 0x1c2   :  { %3320 = vmatpush3.bf16.msra.mxu0 %v3722_v11 }
 0x1c3   :  { %3342 = vmatpush3.bf16.msra.mxu1 %v3723_v13  ;;  %3349 = vmatprep.subr.bf16.mxu0 %v3724_v14 }
 0x1c4   :  { %3411 = vmatprep.subr.bf16.mxu1 %v3956_v33 }
 0x1c5   :  { %2332 = vmatmul.mubr.bf16.vlgmr.msra.gmra.mxu0 %v4108_v41 }
 0x1c6   :  { %2372 = vmatmul.mubr.bf16.vlgmr.msra.gmra.mxu1 %v4106_v0  ;;  %3350 = vmatpush3.bf16.msra.mxu0 %v3725_v15  ;;  %v3757_v0 = vld [vmem:[#allocation13 + $0x90] sm:$0xff]  }
 0x1c7   :  { %3351 = vmatprep.subr.bf16.mxu0 %v3726_v16  ;;  %3412 = vmatpush3.bf16.msra.mxu1 %v3742_v34  ;;  %v3749_v34 = vld [vmem:[#allocation11 + $0x60] sm:$0xff]  }
 0x1c8   :  { %3413 = vmatprep.subr.bf16.mxu1 %v3956_v33  ;;  %3427 = vmatprep.mubr.msk.bf16.mxu1 %vm3957_vm0, %v3956_v33 }
 0x1ca   :  { %3352 = vmatpush3.bf16.msra.mxu0 %v3727_v17 }
 0x1cb   :  { %3353 = vmatprep.subr.bf16.mxu0 %v3728_v18  ;;  %3414 = vmatpush3.bf16.msra.mxu1 %v3745_v6  ;;  %v3750_v6 = vld [vmem:[#allocation11 + $0x20] sm:$0xff]  }
 0x1cc   :  { %3415 = vmatprep.subr.bf16.mxu1 %v3956_v33 }
 0x1ce   :  { %3354 = vmatpush3.bf16.msra.mxu0 %v3729_v19 }
 0x1cf   :  { %3355 = vmatprep.subr.bf16.mxu0 %v3730_v20  ;;  %3416 = vmatpush3.bf16.msra.mxu1 %v3748_v36  ;;  %v3752_v36 = vld [vmem:[#allocation11 + $0x58] sm:$0xff]  }
 0x1d0   :  { %3417 = vmatprep.subr.bf16.mxu1 %v3956_v33 }
 0x1d2   :  { %3356 = vmatpush3.bf16.msra.mxu0 %v3731_v21 }
 0x1d3   :  { %3357 = vmatprep.subr.bf16.mxu0 %v3732_v12  ;;  %3418 = vmatpush3.bf16.msra.mxu1 %v3751_v37  ;;  %v3753_v37 = vld [vmem:[#allocation11 + $0x18] sm:$0xff]  }
 0x1d4   :  { %3419 = vmatprep.subr.bf16.mxu1 %v3956_v33 }
 0x1d6   :  { %3358 = vmatpush3.bf16.msra.mxu0 %v3733_v22 }
 0x1d7   :  { %3359 = vmatprep.subr.bf16.mxu0 %v3734_v23  ;;  %3420 = vmatpush3.bf16.msra.mxu1 %v3754_v8  ;;  %v3758_v8 = vld [vmem:[#allocation11 + $0x48] sm:$0xff]  }
 0x1d8   :  { %3421 = vmatprep.subr.bf16.mxu1 %v3956_v33 }
 0x1da   :  { %3360 = vmatpush3.bf16.msra.mxu0 %v3735_v24 }
 0x1db   :  { %3361 = vmatprep.subr.bf16.mxu0 %v3736_v25  ;;  %3422 = vmatpush3.bf16.msra.mxu1 %v3757_v0  ;;  %v3741_v25 = vld [vmem:[#allocation11 + $0x38] sm:$0xff]  }
 0x1dc   :  { %3423 = vmatprep.subr.bf16.mxu1 %v3956_v33 }
 0x1de   :  { %3362 = vmatpush3.bf16.msra.mxu0 %v3737_v26  ;;  %v3743_v26 = vld [vmem:[#allocation11 + $0x70] sm:$0xff]  }
 0x1df   :  { %3363 = vmatprep.subr.bf16.mxu0 %v3738_v27  ;;  %3424 = vmatpush3.bf16.msra.mxu1 %v3760_v47  ;;  %v3744_v27 = vld [vmem:[#allocation11 + $0x30] sm:$0xff]  }
 0x1e0   :  { %3425 = vmatprep.subr.bf16.mxu1 %v3956_v33 }
 0x1e2   :  { %3364 = vmatpush3.bf16.msra.mxu0 %v3739_v28  ;;  %v3746_v28 = vld [vmem:[#allocation11 + $0x68] sm:$0xff]  }
 0x1e3   :  { %3380 = vmatprep.subr.bf16.mxu0 %v3740_v32  ;;  %3426 = vmatpush3.bf16.msra.mxu1 %v3763_v50  ;;  %v3747_v32 = vld [vmem:[#allocation11 + $0x28] sm:$0xff]  }
 0x1e4   :  { %3431 = vmatprep.subr.bf16.mxu1 %v3956_v33 }
 0x205   :  { %v1426_v39 = vpop.f32.mrf.mxu0  ;;  %v1467_v5 = vpop.f32.mrf.mxu1 }
 0x206   :  { %v1427_v40 = vadd.f32 %v1426_v39, %v868_v38  ;;  %v3756_v38 = vld [vmem:[#allocation11 + $0x10] sm:$0xff]  }
 0x207   :  { %v1428_v2 = vpop.f32.mrf.mxu0  ;;  %v1469_v43 = vpop.f32.mrf.mxu1 }
 0x208   :  { %v4127_v41 = vadd.f32 %v1467_v5, %v1427_v40  ;;  %v1429_v42 = vadd.f32 %v1428_v2, %v872_v31  ;;  %v1701_v40 = vrot.slane %v1688_v62, %v4065_v9  ;;  %v3759_v5 = vld [vmem:[#allocation11 + $0x8] sm:$0xff]   ;;  %v3761_v2 = vld [vmem:[#allocation11 + $0x40] sm:$0xff]  }
 0x209   :  { %v1430_v44 = vpop.f32.mrf.mxu0  ;;  %v1471_v46 = vpop.f32.mrf.mxu1 }
 0x20a   :  { %v1470_v45 = vadd.f32 %v1469_v43, %v1429_v42 }
 0x20b   :  { %v1431_v48 = vpop.f32.mrf.mxu0  ;;  %v1472_v49 = vpop.f32.mrf.mxu1 }
 0x20c   :  { %v1555_v12 = vmax.f32 %v1470_v45, 0.0  ;;  %v3762_v48 = vld [vmem:[#allocation11] sm:$0xff]   ;;  %v1554_v49 = vmax.f32 %v4127_v41, 0.0  ;;  %v3766_v41 = vld [vmem:[#allocation11 + $0xa8] sm:$0xff]  }
 0x20e   :  { %v1558_v10 = vpack.c.bf16 %v1555_v12, %v1555_v12  ;;  %v1557_v9 = vpack.c.bf16 %v1554_v49, %v1554_v49 }
 0x225   :  { %v3277_v51 = vpop.f32.mrf.mxu0  ;;  %v3299_v52 = vpop.f32.mrf.mxu1 }
 0x227   :  { %v3278_v29 = vpop.f32.mrf.mxu0  ;;  %v3300_v55 = vpop.f32.mrf.mxu1 }
 0x228   :  { %v3279_v54 = vadd.f32 %v3278_v29, %v3277_v51  ;;  %v3301_v30 = vadd.f32 %v3300_v55, %v3299_v52  ;;  %v3764_v29 = vld [vmem:[#allocation11 + $0xb8] sm:$0xff]   ;;  %v3765_v55 = vld [vmem:[#allocation11 + $0xb0] sm:$0xff]  }
 0x229   :  { %v3280_v56 = vpop.f32.mrf.mxu0  ;;  %v3302_v58 = vpop.f32.mrf.mxu1 }
 0x22a   :  { %v1509_v57 = vadd.f32 %v3279_v54, %v876_v53  ;;  %v3768_v56 = vld [vmem:[#allocation11 + $0x98] sm:$0xff]   ;;  %v3770_v58 = vld [vmem:[#allocation11 + $0x88] sm:$0xff]  }
 0x22b   :  { %v3281_v59 = vpop.f32.mrf.mxu0  ;;  %v3303_v61 = vpop.f32.mrf.mxu1 }
 0x22c   :  { %v4135_v60 = vadd.f32 %v3301_v30, %v1509_v57  ;;  %v3767_v30 = vld [vmem:[#allocation11 + $0xa0] sm:$0xff]   ;;  %v3769_v57 = vld [vmem:[#allocation11 + $0x90] sm:$0xff]  }
 0x22d   :  { %v3771_v59 = vld [vmem:[#allocation11 + $0x80] sm:$0xff]  }
 0x22e   :  { %v1556_v61 = vmax.f32 %v4135_v60, 0.0 }
 0x230   :  { %v1559_v62 = vpack.c.bf16 %v1556_v61, %v1556_v61 }
 0x265   :  { %v2251_v3 = vpop.f32.mrf.mxu0  ;;  %v2292_v11 = vpop.f32.mrf.mxu1 }
 0x266   :  { %v2252_v4 = vadd.f32 %v2251_v3, %v1693_v63 }
 0x267   :  { %v2253_v13 = vpop.f32.mrf.mxu0  ;;  %v2294_v16 = vpop.f32.mrf.mxu1 }
 0x268   :  { %v2293_v14 = vadd.f32 %v2292_v11, %v2252_v4  ;;  %v2254_v15 = vadd.f32 %v2253_v13, %v1697_v1 }
 0x269   :  { %v2255_v17 = vpop.f32.mrf.mxu0  ;;  %v2296_v19 = vpop.f32.mrf.mxu1 }
 0x26a   :  { %v2295_v18 = vadd.f32 %v2294_v16, %v2254_v15  ;;  %v2379_v20 = vmax.f32 %v2293_v14, 0.0 }
 0x26b   :  { %v2256_v21 = vpop.f32.mrf.mxu0  ;;  %v2297_v23 = vpop.f32.mrf.mxu1 }
 0x26c   :  { %v2380_v22 = vmax.f32 %v2295_v18, 0.0  ;;  %v2382_v7 = vpack.c.bf16 %v2379_v20, %v2379_v20 }
 0x26e   :  { %v2383_v24 = vpack.c.bf16 %v2380_v22, %v2380_v22  ;;  %v3260_v22 = vld [vmem:[%s4169_s9] ss:$0 sm:$0xff] }
 0x270   :  { %2657 = vmatprep.mubr.bf16.mxu0 %v2383_v24 }
 0x271   :  { %2658 = vmatmul.mubr.bf16.vlgmr.msra.gmra.mxu0 %v2382_v7 }
 0x272   :  { %3381 = vmatpush3.bf16.msra.mxu0 %v3741_v25  ;;  %2881 = vmatprep.mubr.bf16.mxu0 %v1558_v10 }
 0x273   :  { %3382 = vmatprep.subr.bf16.mxu0 %v3743_v26 }
 0x276   :  { %3383 = vmatpush3.bf16.msra.mxu0 %v3744_v27 }
 0x277   :  { %3384 = vmatprep.subr.bf16.mxu0 %v3746_v28 }
 0x27a   :  { %3385 = vmatpush3.bf16.msra.mxu0 %v3747_v32 }
 0x27b   :  { %3386 = vmatprep.subr.bf16.mxu0 %v3749_v34 }
 0x27e   :  { %3387 = vmatpush3.bf16.msra.mxu0 %v3750_v6 }
 0x27f   :  { %3388 = vmatprep.subr.bf16.mxu0 %v3752_v36 }
 0x282   :  { %3389 = vmatpush3.bf16.msra.mxu0 %v3753_v37 }
 0x283   :  { %3390 = vmatprep.subr.bf16.mxu0 %v3755_v35 }
 0x285   :  { %v3321_v31 = vpop.f32.mrf.mxu0 }
 0x286   :  { %v3343_v39 = vpop.f32.mrf.mxu1  ;;  %3391 = vmatpush3.bf16.msra.mxu0 %v3756_v38 }
 0x287   :  { %v3322_v0 = vpop.f32.mrf.mxu0  ;;  %3392 = vmatprep.subr.bf16.mxu0 %v3758_v8 }
 0x288   :  { %v3323_v42 = vadd.f32 %v3322_v0, %v3321_v31  ;;  %v3344_v43 = vpop.f32.mrf.mxu1 }
 0x289   :  { %v3324_v44 = vpop.f32.mrf.mxu0  ;;  %v3345_v46 = vadd.f32 %v3344_v43, %v3343_v39 }
 0x28a   :  { %v2334_v45 = vadd.f32 %v3323_v42, %v1701_v40  ;;  %v3346_v47 = vpop.f32.mrf.mxu1  ;;  %3393 = vmatpush3.bf16.msra.mxu0 %v3759_v5 }
 0x28b   :  { %v3325_v50 = vpop.f32.mrf.mxu0  ;;  %3394 = vmatprep.subr.bf16.mxu0 %v3761_v2 }
 0x28c   :  { %v2374_v51 = vadd.f32 %v3345_v46, %v2334_v45  ;;  %v3347_v52 = vpop.f32.mrf.mxu1 }
 0x28e   :  { %v2381_v53 = vmax.f32 %v2374_v51, 0.0  ;;  %3395 = vmatpush3.bf16.msra.mxu0 %v3762_v48 }
 0x290   :  { %v2384_v54 = vpack.c.bf16 %v2381_v53, %v2381_v53 }
 0x291   :  { %2882 = vmatmul.mubr.bf16.vlgmr.msra.gmra.mxu0 %v1557_v9 }
 0x292   :  { %3428 = vmatmul.mubr.bf16.vlgmr.msra.gmra.mxu1 %v2384_v54 }
 0x293   :  { %3432 = vmatpush3.bf16.msra.mxu1 %v3764_v29  ;;  %3447 = vmatprep.mubr.msk.bf16.mxu1 %vm3957_vm0, %v3956_v33 }
 0x294   :  { %3433 = vmatprep.subr.bf16.mxu1 %v3956_v33 }
 0x297   :  { %3434 = vmatpush3.bf16.msra.mxu1 %v3765_v55 }
 0x298   :  { %3435 = vmatprep.subr.bf16.mxu1 %v3956_v33 }
 0x29b   :  { %3436 = vmatpush3.bf16.msra.mxu1 %v3766_v41 }
 0x29c   :  { %3437 = vmatprep.subr.bf16.mxu1 %v3956_v33 }
 0x29f   :  { %3438 = vmatpush3.bf16.msra.mxu1 %v3767_v30 }
 0x2a0   :  { %3439 = vmatprep.subr.bf16.mxu1 %v3956_v33 }
 0x2a3   :  { %3440 = vmatpush3.bf16.msra.mxu1 %v3768_v56 }
 0x2a4   :  { %3441 = vmatprep.subr.bf16.mxu1 %v3956_v33 }
 0x2a7   :  { %3442 = vmatpush3.bf16.msra.mxu1 %v3769_v57 }
 0x2a8   :  { %3443 = vmatprep.subr.bf16.mxu1 %v3956_v33 }
 0x2ab   :  { %3444 = vmatpush3.bf16.msra.mxu1 %v3770_v58 }
 0x2ac   :  { %3445 = vmatprep.subr.bf16.mxu1 %v3956_v33 }
 0x2af   :  { %3446 = vmatpush3.bf16.msra.mxu1 %v3771_v59 }
 0x2b2   :  { %3448 = vmatmul.mubr.bf16.vlgmr.msra.gmra.mxu1 %v1559_v62 }
 0x331   :  { %v3365_v63 = vpop.f32.mrf.mxu0 }
 0x333   :  { %v3366_v1 = vpop.f32.mrf.mxu0 }
 0x334   :  { %v3367_v20 = vadd.f32 %v3366_v1, %v3365_v63 }
 0x335   :  { %v3368_v3 = vpop.f32.mrf.mxu0 }
 0x337   :  { %v3369_v4 = vpop.f32.mrf.mxu0 }
 0x351   :  { %v3396_v11 = vpop.f32.mrf.mxu0 }
 0x352   :  { %v2699_v13 = vpop.f32.mrf.mxu1 }
 0x353   :  { %v3397_v14 = vpop.f32.mrf.mxu0  ;;  %v2700_v21 = vadd.f32 %v3367_v20, %v2699_v13 }
 0x354   :  { %v3429_v15 = vpop.f32.mrf.mxu1  ;;  %v3398_v60 = vadd.f32 %v3397_v14, %v3396_v11 }
 0x355   :  { %v3399_v16 = vpop.f32.mrf.mxu0 }
 0x356   :  { %v2702_v17 = vpop.f32.mrf.mxu1  ;;  %v2884_v12 = vadd.f32 %v3398_v60, %v2700_v21 }
 0x357   :  { %v3400_v18 = vpop.f32.mrf.mxu0 }
 0x358   :  { %v3430_v19 = vpop.f32.mrf.mxu1 }
 0x372   :  { %v2923_v33 = vpop.f32.mrf.mxu1 }
 0x373   :  { %v2924_v23 = vadd.f32 %v2923_v33, %v2884_v12 }
 0x374   :  { %v3449_v24 = vpop.f32.mrf.mxu1 }
 0x375   :  { %v2936_v25 = vadd.f32 %v3260_v22, %v2924_v23 }
 0x376   :  { %v2926_v7 = vpop.f32.mrf.mxu1 }
 0x377   :  { %2937 = vst [vmem:[#allocation14] sm:$0xff] %v2936_v25 }
 0x378   :  { %v3450_v26 = vpop.f32.mrf.mxu1 }
 0x379   :  { %3923 = shalt.err (!%p3920_p11)
}
 0x37a   :  { %2947 = dma.vmem_to_hbm [thread:$0]  %s2945_s30, 128, %s4170_s10, [#allocation4]  }
 0x37b   :  { %3940 = dma.done.wait [#allocation4], 128  }
 0x37c   :  { %3941 = vsyncadd [#allocation4], 4294967168 }
 0x37d   :  { %2951 = vsyncpa [#allocation3], 1 }
 0x37e   :  { %2952 = vsyncpa [#allocation6], 1 }
 0x37f   :  { %2953 = vsyncpa [#allocation9], 1 }
 0x380   :  { %2954 = vsyncpa [#allocation12], 1 }
 0x381   :  { %2955 = vsyncpa [#allocation4], 1 }

</bundles_post_ra>
